<compile_context>
chip_gen: v7x
topology: tpu7x:2x2x1
jax: 0.10.0
libtpu: 0.0.40
codegen_flags: <defaults>
</compile_context>

<pallas_src>
import functools
import math

import numpy as np
import jax
import jax.numpy as jnp
from jax import lax
from jax.experimental import pallas as pl
from jax.experimental.pallas import tpu as pltpu

LANE = 128  # one lane tile per gate (gate columns [r | z | n], 3 * LANE wide)


# ------------------------------- fused kernel ---------------------------------

def _bigru_kernel(x_ref, wcat_ref, whh_ref, bcat_ref, bhn_ref, out_ref,
                  xin_scr, proj_scr, seq_scr, *, T, Bp, Hd, Sp, G, Dp):
    """One grid step == one GRU layer (both directions fused).

    Lane layout of the running state h (Bp, Sp): fwd hidden in [0:Hd),
    bwd hidden in [Hd:2*Hd), rest provably zero.
    Gate columns (width G = 3*Sp): gate g in [r,z,n] owns [g*Sp, (g+1)*Sp),
    with fwd lanes at [g*Sp : g*Sp+Hd) and bwd lanes at [g*Sp+Hd : g*Sp+2*Hd).
    """
    l = pl.program_id(0)
    last = pl.num_programs(0) - 1
    H2 = 2 * Hd

    # ------------- layer input slab (off the serial chain) --------------------
    @pl.when(l == 0)
    def _():
        xin_scr[...] = x_ref[...]

    @pl.when(l > 0)
    def _():
        lane = lax.broadcasted_iota(jnp.int32, (Bp, H2), 1)
        fwd_mask = lane < Hd

        def build(s, carry):
            row_s = pl.multiple_of(s * Bp, Bp)
            row_r = pl.multiple_of((T - 1 - s) * Bp, Bp)
            # seq row s holds fwd hidden of time s (lanes [0:Hd)) and bwd hidden
            # of time T-1-s (lanes [Hd:2Hd)); combine to the layer input at time s.
            fwd = seq_scr[pl.ds(row_s, Bp), 0:H2]
            bwd = seq_scr[pl.ds(row_r, Bp), 0:H2]
            xin_scr[pl.ds(row_s, Bp), 0:H2] = jnp.where(fwd_mask, fwd, bwd)
            # Lanes [H2:Dp) of xin keep layer-0 data, but wcat rows there are
            # zero for l > 0, so they contribute nothing.
            return carry

        lax.fori_loop(0, T, build, 0, unroll=True)

    # ------- batched input projection: one (T*B, Dp) x (Dp, 2G) matmul --------
    # proj[:, :G]  = x_t @ W_ih_fwd (+ folded biases), proj[:, G:] = x_t @ W_ih_bwd.
    proj_scr[...] = (
        jnp.dot(xin_scr[...], wcat_ref[0], preferred_element_type=jnp.float32)
        + bcat_ref[0])

    # --------------------------- serial recurrence ----------------------------
    whh = whh_ref[0]                                    # (2*Hd, G), hoisted load
    bhn = jnp.broadcast_to(bhn_ref[0], (Bp, Sp))        # hoisted broadcast

    def step(s, h):
        row_s = pl.multiple_of(s * Bp, Bp)
        row_r = pl.multiple_of((T - 1 - s) * Bp, Bp)
        # fwd lanes come from time s, bwd lanes from time T-1-s (already biased).
        gi = (proj_scr[pl.ds(row_s, Bp), 0:G]
              + proj_scr[pl.ds(row_r, Bp), G:2 * G])    # (Bp, G)
        # Recurrent matmul with K = 2*Hd (padded h lanes are zero anyway).
        gh = jnp.dot(h[:, 0:H2], whh, preferred_element_type=jnp.float32)
        r = jax.nn.sigmoid(gi[:, 0:Sp] + gh[:, 0:Sp])
        z = jax.nn.sigmoid(gi[:, Sp:2 * Sp] + gh[:, Sp:2 * Sp])
        n = jnp.tanh(gi[:, 2 * Sp:3 * Sp] + r * (gh[:, 2 * Sp:3 * Sp] + bhn))
        h_new = z * (h - n) + n
        seq_scr[pl.ds(row_s, Bp), :] = h_new            # single store per step
        return h_new

    h0 = jnp.zeros((Bp, Sp), jnp.float32)
    h_last = lax.fori_loop(0, T, step, h0, unroll=True)

    # After step T-1: lanes [0:Hd) = fwd hidden at time T-1, lanes [Hd:2Hd) =
    # bwd hidden at time 0 -> exactly torch's concat([out_f[:, -1], out_b[:, 0]]).
    @pl.when(l == last)
    def _():
        out_ref[...] = h_last


def fused_bigru_stack(x2d, wcat, whh, bcat, bhn, *, seq_len, batch_pad, hidden_dim):
    """x2d: (T*Bp, Dp) f32 (time-major, batch padded, input-dim padded).

    wcat: (L, Dp, 2*G)  [W_ih_fwd | W_ih_bwd], gate-lane padded, folded biases in bcat
    whh : (L, 2*Hd, G)  block-diagonal fwd/bwd recurrent weights
    bcat: (L, 1, 2*G)   b_ih (+ folded bhh_r, bhh_z)
    bhn : (L, 1, Sp)    n-gate bhh only
    Returns (Bp, Sp) slab; lanes [0:hidden_dim) hold the module output.
    """
    T, Bp = seq_len, batch_pad
    TB, Dp = x2d.shape
    L = wcat.shape[0]
    Hd = hidden_dim // 2
    Sp = LANE
    G = 3 * Sp
    assert TB == T * Bp and Bp % 8 == 0
    assert 2 * Hd <= Sp, "hidden_dim per direction must fit one lane tile"
    assert wcat.shape == (L, Dp, 2 * G)
    assert whh.shape == (L, 2 * Hd, G)
    assert bcat.shape == (L, 1, 2 * G) and bhn.shape == (L, 1, Sp)

    kernel = functools.partial(_bigru_kernel, T=T, Bp=Bp, Hd=Hd, Sp=Sp, G=G, Dp=Dp)

    return pl.pallas_call(
        kernel,
        out_shape=jax.ShapeDtypeStruct((Bp, Sp), jnp.float32),
        grid=(L,),
        in_specs=[
            pl.BlockSpec((TB, Dp), lambda l: (0, 0)),          # x: resident
            pl.BlockSpec((1, Dp, 2 * G), lambda l: (l, 0, 0)),  # per-layer weights
            pl.BlockSpec((1, 2 * Hd, G), lambda l: (l, 0, 0)),
            pl.BlockSpec((1, 1, 2 * G), lambda l: (l, 0, 0)),
            pl.BlockSpec((1, 1, Sp), lambda l: (l, 0, 0)),
        ],
        out_specs=pl.BlockSpec((Bp, Sp), lambda l: (0, 0)),
        scratch_shapes=[
            pltpu.VMEM((TB, Dp), jnp.float32),     # xin: layer input slab
            pltpu.VMEM((TB, 2 * G), jnp.float32),  # proj: fwd|bwd input projections
            pltpu.VMEM((TB, Sp), jnp.float32),     # seq: inter-layer hidden states
        ],
        compiler_params=pltpu.CompilerParams(
            dimension_semantics=("arbitrary",),     # layers carry scratch state
            vmem_limit_bytes=32 * 1024 * 1024),
    )(x2d, wcat, whh, bcat, bhn)


# ------------------------------ weight packing ---------------------------------

def pack_gru_weights(gru_params, *, num_layers, emb_dim, hidden_dim, lane=LANE):
    """Pack torch-layout GRU weights into the fused kernel layout (see kernel doc)."""
    Hd = hidden_dim // 2
    Sp = lane
    G = 3 * Sp
    Dp = ((max(emb_dim, 2 * Hd) + 7) // 8) * 8     # no zero-row DMA beyond this

    wcat = np.zeros((num_layers, Dp, 2 * G), np.float32)
    whhp = np.zeros((num_layers, 2 * Hd, G), np.float32)
    bcat = np.zeros((num_layers, 1, 2 * G), np.float32)
    bhn = np.zeros((num_layers, 1, Sp), np.float32)

    for l in range(num_layers):
        din = emb_dim if l == 0 else 2 * Hd
        wih_f, whh_f, bih_f, bhh_f = [np.asarray(a, np.float32) for a in gru_params[(l, 0)]]
        wih_b, whh_b, bih_b, bhh_b = [np.asarray(a, np.float32) for a in gru_params[(l, 1)]]
        for g in range(3):                          # torch gate order [r, z, n]
            rows = slice(g * Hd, (g + 1) * Hd)
            f0, f1 = g * Sp, g * Sp + Hd            # fwd lanes of gate g
            b0, b1 = g * Sp + Hd, g * Sp + 2 * Hd   # bwd lanes of gate g
            # input weights: fwd direction in cols [0:G), bwd in cols [G:2G)
            wcat[l, :din, f0:f1] = wih_f[rows, :].T
            wcat[l, :din, G + b0:G + b1] = wih_b[rows, :].T
            # recurrent weights (contraction over 2*Hd hidden lanes)
            whhp[l, :Hd, f0:f1] = whh_f[rows, :].T
            whhp[l, Hd:2 * Hd, b0:b1] = whh_b[rows, :].T
            # biases: fold bhh_r / bhh_z into b_ih; keep bhh_n separate (torch: r*(gh_n+bhh_n))
            fold_f = bhh_f[rows] if g < 2 else 0.0
            fold_b = bhh_b[rows] if g < 2 else 0.0
            bcat[l, 0, f0:f1] = bih_f[rows] + fold_f
            bcat[l, 0, G + b0:G + b1] = bih_b[rows] + fold_b
        bhn[l, 0, 0:Hd] = bhh_f[2 * Hd:3 * Hd]
        bhn[l, 0, Hd:2 * Hd] = bhh_b[2 * Hd:3 * Hd]

    return (jnp.asarray(wcat), jnp.asarray(whhp), jnp.asarray(bcat), jnp.asarray(bhn))


# ------------------------------- forward (glue) ---------------------------------

def embed_inputs(inputs, cpt_emb, rel_emb):
    # TODO(synk): embedding gather/concat kept in XLA; an in-kernel gather via
    # SMEM-prefetched indices is possible but adds lowering risk for negligible
    # gain at this problem size.
    h_idx, r_idx, t_idx = jnp.split(inputs, 3, axis=1)
    h = jnp.take(cpt_emb, h_idx, axis=0)            # (B, S/3, E)
    t = jnp.take(cpt_emb, t_idx, axis=0)
    r = jnp.take(rel_emb, r_idx, axis=0)
    # input_dropout is identity at inference.
    x = jnp.concatenate([h, r, t], axis=1).astype(jnp.float32)   # (B, S, E)
    return jnp.transpose(x, (1, 0, 2))                           # (T, B, E)


@functools.partial(jax.jit, static_argnames=("num_layers", "hidden_dim"))
def triple_encoder_forward_pallas(inputs, cpt_emb, rel_emb, packed, *,
                                  num_layers, hidden_dim):
    """inputs: (B, S) int32 -> (B, hidden_dim) float32 via the fused Pallas GRU stack."""
    wcat, whh, bcat, bhn = packed
    x_tbd = embed_inputs(inputs, cpt_emb, rel_emb)   # (T, B, E)
    T, B, E = x_tbd.shape
    Dp = wcat.shape[1]
    Bp = ((B + 7) // 8) * 8                          # pad batch to a sublane multiple

    x_pad = jnp.zeros((T, Bp, Dp), jnp.float32).at[:, :B, :E].set(x_tbd)
    x2d = x_pad.reshape(T * Bp, Dp)

    raw = fused_bigru_stack(x2d, wcat, whh, bcat, bhn,
                            seq_len=T, batch_pad=Bp, hidden_dim=hidden_dim)
    # output_dropout is identity at inference.
    return raw[:B, :hidden_dim]


# ------------------------------ pure-JAX reference ------------------------------

def gru_layer_ref(x_tbd, wih, whh, bih, bhh):
    H = whh.shape[1]
    B = x_tbd.shape[1]

    def step(h, x_t):
        gi = x_t @ wih.T + bih
        gh = h @ whh.T + bhh
        r = jax.nn.sigmoid(gi[:, 0:H] + gh[:, 0:H])
        z = jax.nn.sigmoid(gi[:, H:2 * H] + gh[:, H:2 * H])
        n = jnp.tanh(gi[:, 2 * H:3 * H] + r * gh[:, 2 * H:3 * H])
        h_new = (1.0 - z) * n + z * h
        return h_new, h_new

    h0 = jnp.zeros((B, H), jnp.float32)
    _, ys = lax.scan(step, h0, x_tbd)
    return ys


def triple_encoder_forward_ref(inputs, params, *, num_layers, hidden_dim):
    x_tbd = embed_inputs(inputs, params["cpt_emb"], params["rel_emb"])
    Hd = hidden_dim // 2
    layer_in = x_tbd
    for l in range(num_layers):
        outs = []
        for d in range(2):                          # 0: forward, 1: backward
            wih, whh, bih, bhh = params["gru"][(l, d)]
            xin = layer_in if d == 0 else layer_in[::-1]
            out = gru_layer_ref(xin, wih, whh, bih, bhh)
            if d == 1:
                out = out[::-1]
            outs.append(out)
        layer_in = jnp.concatenate(outs, axis=-1)   # (T, B, hidden_dim)
    out_f = layer_in[-1, :, :Hd]
    out_b = layer_in[0, :, Hd:]
    return jnp.concatenate([out_f, out_b], axis=1)


# -------------------------------- param init ------------------------------------

def init_params(key, *, num_concepts, num_relations, emb_dim, hidden_dim, num_layers):
    Hd = hidden_dim // 2
    bound = 1.0 / math.sqrt(Hd)
    k_cpt, k_rel, k = jax.random.split(key, 3)
    params = {
        "cpt_emb": jax.random.normal(k_cpt, (num_concepts, emb_dim), jnp.float32),
        "rel_emb": jax.random.normal(k_rel, (num_relations, emb_dim), jnp.float32),
        "gru": {},
    }
    for l in range(num_layers):
        in_dim = emb_dim if l == 0 else hidden_dim
        for d in range(2):
            k, k1, k2, k3, k4 = jax.random.split(k, 5)
            wih = jax.random.uniform(k1, (3 * Hd, in_dim), jnp.float32, -bound, bound)
            whh = jax.random.uniform(k2, (3 * Hd, Hd), jnp.float32, -bound, bound)
            bih = jax.random.uniform(k3, (3 * Hd,), jnp.float32, -bound, bound)
            bhh = jax.random.uniform(k4, (3 * Hd,), jnp.float32, -bound, bound)
            params["gru"][(l, d)] = (wih, whh, bih, bhh)   # torch layout
    return params


# ------------------------------------ main ---------------------------------------

if __name__ == "__main__":
    B, S = 2, 9                        # seq_len divisible by 3 (h, r, t chunks)
    emb_dim, hidden_dim, num_layers = 32, 32, 2
    num_concepts, num_relations = 50, 10

    key = jax.random.PRNGKey(0)
    k_params, k_inp = jax.random.split(key)
    params = init_params(
        k_params,
        num_concepts=num_concepts,
        num_relations=num_relations,
        emb_dim=emb_dim,
        hidden_dim=hidden_dim,
        num_layers=num_layers,
    )
    # indices valid for both embedding tables
    inputs = jax.random.randint(k_inp, (B, S), 0, num_relations, dtype=jnp.int32)

    packed = pack_gru_weights(params["gru"], num_layers=num_layers,
                              emb_dim=emb_dim, hidden_dim=hidden_dim)

    out = triple_encoder_forward_pallas(
        inputs, params["cpt_emb"], params["rel_emb"], packed,
        num_layers=num_layers, hidden_dim=hidden_dim)
    out = jax.block_until_ready(out)

    ref = triple_encoder_forward_ref(
        inputs, params, num_layers=num_layers, hidden_dim=hidden_dim)
    ref = jax.block_until_ready(ref)

    assert out.shape == (B, hidden_dim), out.shape
    max_err = float(jnp.max(jnp.abs(out - ref)))
    assert jnp.allclose(out, ref, atol=1e-4, rtol=1e-4), max_err
    print("KERNEL_OK")
</pallas_src>

<mosaic_0001>
module attributes {stable_mosaic.version = 11 : i64} {
  func.func @_bigru_kernel(%arg0: i32, %arg1: memref<72x32xf32, #tpu.memory_space<vmem>>, %arg2: memref<1x32x768xf32, #tpu.memory_space<vmem>>, %arg3: memref<1x32x384xf32, #tpu.memory_space<vmem>>, %arg4: memref<1x1x768xf32, #tpu.memory_space<vmem>>, %arg5: memref<1x1x128xf32, #tpu.memory_space<vmem>>, %arg6: memref<8x128xf32, #tpu.memory_space<vmem>>, %arg7: memref<72x32xf32, #tpu.memory_space<vmem>>, %arg8: memref<72x768xf32, #tpu.memory_space<vmem>>, %arg9: memref<72x128xf32, #tpu.memory_space<vmem>>) attributes {dimension_semantics = [#tpu.dimension_semantics<arbitrary>], iteration_bounds = array<i64: 2>, scalar_prefetch = 0 : i64, scratch_operands = 3 : i64, tpu.core_type = #tpu.core_type<tc>, window_params = [{pipeline_mode = #tpu.pipeline_mode<synchronous>, transform_indices = @transform_0, window_bounds = array<i64: 72, 32>}, {transform_indices = @transform_1, window_bounds = array<i64: 1, 32, 768>}, {transform_indices = @transform_2, window_bounds = array<i64: 1, 32, 384>}, {transform_indices = @transform_3, window_bounds = array<i64: 1, 1, 768>}, {transform_indices = @transform_4, window_bounds = array<i64: 1, 1, 128>}, {pipeline_mode = #tpu.pipeline_mode<synchronous>, transform_indices = @transform_5, window_bounds = array<i64: 8, 128>}]} {
    %c0_i32 = arith.constant 0 : i32
    %0 = arith.cmpi eq, %arg0, %c0_i32 : i32
    %1 = arith.extui %0 : i1 to i32
    %c0_i32_0 = arith.constant 0 : i32
    %2 = arith.cmpi ne, %1, %c0_i32_0 : i32
    scf.if %2 {
      %c0_102 = arith.constant 0 : index
      %c0_103 = arith.constant 0 : index
      %376 = vector.load %arg1[%c0_102, %c0_103] : memref<72x32xf32, #tpu.memory_space<vmem>>, vector<72x32xf32>
      %c0_104 = arith.constant 0 : index
      %c0_105 = arith.constant 0 : index
      %377 = vector.load %arg7[%c0_104, %c0_105] : memref<72x32xf32, #tpu.memory_space<vmem>>, vector<72x32xf32>
      tpu.vector_store %arg7[%c0_104, %c0_105], %376 {strides = array<i32>} : memref<72x32xf32, #tpu.memory_space<vmem>>, vector<72x32xf32>,
    } else {
    }
    %c0_i32_1 = arith.constant 0 : i32
    %3 = arith.cmpi sgt, %arg0, %c0_i32_1 : i32
    %4 = arith.extui %3 : i1 to i32
    %c0_i32_2 = arith.constant 0 : i32
    %5 = arith.cmpi ne, %4, %c0_i32_2 : i32
    scf.if %5 {
      %376 = tpu.iota {dimensions = array<i32: 1>} : vector<8x32xi32>
      %c16_i32 = arith.constant 16 : i32
      %377 = vector.broadcast %c16_i32 : i32 to vector<8x32xi32>
      %378 = arith.cmpi slt, %376, %377 : vector<8x32xi32>
      %c0_i32_102 = arith.constant 0 : i32
      %c8_i32_103 = arith.constant 8 : i32
      %379 = arith.muli %c0_i32_102, %c8_i32_103 : i32
      %380 = tpu.assume_multiple %379, 8 : i32
      %c8_i32_104 = arith.constant 8 : i32
      %381 = arith.subi %c8_i32_104, %c0_i32_102 : i32
      %c8_i32_105 = arith.constant 8 : i32
      %382 = arith.muli %381, %c8_i32_105 : i32
      %383 = tpu.assume_multiple %382, 8 : i32
      %384 = arith.index_cast %380 : i32 to index
      %c0_106 = arith.constant 0 : index
      %385 = vector.load %arg9[%384, %c0_106] : memref<72x128xf32, #tpu.memory_space<vmem>>, vector<8x32xf32>
      %386 = arith.index_cast %383 : i32 to index
      %c0_107 = arith.constant 0 : index
      %387 = vector.load %arg9[%386, %c0_107] : memref<72x128xf32, #tpu.memory_space<vmem>>, vector<8x32xf32>
      %388 = arith.select %378, %385, %387 : vector<8x32xi1>, vector<8x32xf32>
      %389 = arith.index_cast %380 : i32 to index
      %c0_108 = arith.constant 0 : index
      %390 = vector.load %arg7[%389, %c0_108] : memref<72x32xf32, #tpu.memory_space<vmem>>, vector<8x32xf32>
      tpu.vector_store %arg7[%389, %c0_108], %388 {strides = array<i32>} : memref<72x32xf32, #tpu.memory_space<vmem>>, vector<8x32xf32>,
      %c1_i32_109 = arith.constant 1 : i32
      %c8_i32_110 = arith.constant 8 : i32
      %391 = arith.muli %c1_i32_109, %c8_i32_110 : i32
      %392 = tpu.assume_multiple %391, 8 : i32
      %c8_i32_111 = arith.constant 8 : i32
      %393 = arith.subi %c8_i32_111, %c1_i32_109 : i32
      %c8_i32_112 = arith.constant 8 : i32
      %394 = arith.muli %393, %c8_i32_112 : i32
      %395 = tpu.assume_multiple %394, 8 : i32
      %396 = arith.index_cast %392 : i32 to index
      %c0_113 = arith.constant 0 : index
      %397 = vector.load %arg9[%396, %c0_113] : memref<72x128xf32, #tpu.memory_space<vmem>>, vector<8x32xf32>
      %398 = arith.index_cast %395 : i32 to index
      %c0_114 = arith.constant 0 : index
      %399 = vector.load %arg9[%398, %c0_114] : memref<72x128xf32, #tpu.memory_space<vmem>>, vector<8x32xf32>
      %400 = arith.select %378, %397, %399 : vector<8x32xi1>, vector<8x32xf32>
      %401 = arith.index_cast %392 : i32 to index
      %c0_115 = arith.constant 0 : index
      %402 = vector.load %arg7[%401, %c0_115] : memref<72x32xf32, #tpu.memory_space<vmem>>, vector<8x32xf32>
      tpu.vector_store %arg7[%401, %c0_115], %400 {strides = array<i32>} : memref<72x32xf32, #tpu.memory_space<vmem>>, vector<8x32xf32>,
      %c2_i32_116 = arith.constant 2 : i32
      %c8_i32_117 = arith.constant 8 : i32
      %403 = arith.muli %c2_i32_116, %c8_i32_117 : i32
      %404 = tpu.assume_multiple %403, 8 : i32
      %c8_i32_118 = arith.constant 8 : i32
      %405 = arith.subi %c8_i32_118, %c2_i32_116 : i32
      %c8_i32_119 = arith.constant 8 : i32
      %406 = arith.muli %405, %c8_i32_119 : i32
      %407 = tpu.assume_multiple %406, 8 : i32
      %408 = arith.index_cast %404 : i32 to index
      %c0_120 = arith.constant 0 : index
      %409 = vector.load %arg9[%408, %c0_120] : memref<72x128xf32, #tpu.memory_space<vmem>>, vector<8x32xf32>
      %410 = arith.index_cast %407 : i32 to index
      %c0_121 = arith.constant 0 : index
      %411 = vector.load %arg9[%410, %c0_121] : memref<72x128xf32, #tpu.memory_space<vmem>>, vector<8x32xf32>
      %412 = arith.select %378, %409, %411 : vector<8x32xi1>, vector<8x32xf32>
      %413 = arith.index_cast %404 : i32 to index
      %c0_122 = arith.constant 0 : index
      %414 = vector.load %arg7[%413, %c0_122] : memref<72x32xf32, #tpu.memory_space<vmem>>, vector<8x32xf32>
      tpu.vector_store %arg7[%413, %c0_122], %412 {strides = array<i32>} : memref<72x32xf32, #tpu.memory_space<vmem>>, vector<8x32xf32>,
      %c3_i32_123 = arith.constant 3 : i32
      %c8_i32_124 = arith.constant 8 : i32
      %415 = arith.muli %c3_i32_123, %c8_i32_124 : i32
      %416 = tpu.assume_multiple %415, 8 : i32
      %c8_i32_125 = arith.constant 8 : i32
      %417 = arith.subi %c8_i32_125, %c3_i32_123 : i32
      %c8_i32_126 = arith.constant 8 : i32
      %418 = arith.muli %417, %c8_i32_126 : i32
      %419 = tpu.assume_multiple %418, 8 : i32
      %420 = arith.index_cast %416 : i32 to index
      %c0_127 = arith.constant 0 : index
      %421 = vector.load %arg9[%420, %c0_127] : memref<72x128xf32, #tpu.memory_space<vmem>>, vector<8x32xf32>
      %422 = arith.index_cast %419 : i32 to index
      %c0_128 = arith.constant 0 : index
      %423 = vector.load %arg9[%422, %c0_128] : memref<72x128xf32, #tpu.memory_space<vmem>>, vector<8x32xf32>
      %424 = arith.select %378, %421, %423 : vector<8x32xi1>, vector<8x32xf32>
      %425 = arith.index_cast %416 : i32 to index
      %c0_129 = arith.constant 0 : index
      %426 = vector.load %arg7[%425, %c0_129] : memref<72x32xf32, #tpu.memory_space<vmem>>, vector<8x32xf32>
      tpu.vector_store %arg7[%425, %c0_129], %424 {strides = array<i32>} : memref<72x32xf32, #tpu.memory_space<vmem>>, vector<8x32xf32>,
      %c4_i32_130 = arith.constant 4 : i32
      %c8_i32_131 = arith.constant 8 : i32
      %427 = arith.muli %c4_i32_130, %c8_i32_131 : i32
      %428 = tpu.assume_multiple %427, 8 : i32
      %c8_i32_132 = arith.constant 8 : i32
      %429 = arith.subi %c8_i32_132, %c4_i32_130 : i32
      %c8_i32_133 = arith.constant 8 : i32
      %430 = arith.muli %429, %c8_i32_133 : i32
      %431 = tpu.assume_multiple %430, 8 : i32
      %432 = arith.index_cast %428 : i32 to index
      %c0_134 = arith.constant 0 : index
      %433 = vector.load %arg9[%432, %c0_134] : memref<72x128xf32, #tpu.memory_space<vmem>>, vector<8x32xf32>
      %434 = arith.index_cast %431 : i32 to index
      %c0_135 = arith.constant 0 : index
      %435 = vector.load %arg9[%434, %c0_135] : memref<72x128xf32, #tpu.memory_space<vmem>>, vector<8x32xf32>
      %436 = arith.select %378, %433, %435 : vector<8x32xi1>, vector<8x32xf32>
      %437 = arith.index_cast %428 : i32 to index
      %c0_136 = arith.constant 0 : index
      %438 = vector.load %arg7[%437, %c0_136] : memref<72x32xf32, #tpu.memory_space<vmem>>, vector<8x32xf32>
      tpu.vector_store %arg7[%437, %c0_136], %436 {strides = array<i32>} : memref<72x32xf32, #tpu.memory_space<vmem>>, vector<8x32xf32>,
      %c5_i32_137 = arith.constant 5 : i32
      %c8_i32_138 = arith.constant 8 : i32
      %439 = arith.muli %c5_i32_137, %c8_i32_138 : i32
      %440 = tpu.assume_multiple %439, 8 : i32
      %c8_i32_139 = arith.constant 8 : i32
      %441 = arith.subi %c8_i32_139, %c5_i32_137 : i32
      %c8_i32_140 = arith.constant 8 : i32
      %442 = arith.muli %441, %c8_i32_140 : i32
      %443 = tpu.assume_multiple %442, 8 : i32
      %444 = arith.index_cast %440 : i32 to index
      %c0_141 = arith.constant 0 : index
      %445 = vector.load %arg9[%444, %c0_141] : memref<72x128xf32, #tpu.memory_space<vmem>>, vector<8x32xf32>
      %446 = arith.index_cast %443 : i32 to index
      %c0_142 = arith.constant 0 : index
      %447 = vector.load %arg9[%446, %c0_142] : memref<72x128xf32, #tpu.memory_space<vmem>>, vector<8x32xf32>
      %448 = arith.select %378, %445, %447 : vector<8x32xi1>, vector<8x32xf32>
      %449 = arith.index_cast %440 : i32 to index
      %c0_143 = arith.constant 0 : index
      %450 = vector.load %arg7[%449, %c0_143] : memref<72x32xf32, #tpu.memory_space<vmem>>, vector<8x32xf32>
      tpu.vector_store %arg7[%449, %c0_143], %448 {strides = array<i32>} : memref<72x32xf32, #tpu.memory_space<vmem>>, vector<8x32xf32>,
      %c6_i32_144 = arith.constant 6 : i32
      %c8_i32_145 = arith.constant 8 : i32
      %451 = arith.muli %c6_i32_144, %c8_i32_145 : i32
      %452 = tpu.assume_multiple %451, 8 : i32
      %c8_i32_146 = arith.constant 8 : i32
      %453 = arith.subi %c8_i32_146, %c6_i32_144 : i32
      %c8_i32_147 = arith.constant 8 : i32
      %454 = arith.muli %453, %c8_i32_147 : i32
      %455 = tpu.assume_multiple %454, 8 : i32
      %456 = arith.index_cast %452 : i32 to index
      %c0_148 = arith.constant 0 : index
      %457 = vector.load %arg9[%456, %c0_148] : memref<72x128xf32, #tpu.memory_space<vmem>>, vector<8x32xf32>
      %458 = arith.index_cast %455 : i32 to index
      %c0_149 = arith.constant 0 : index
      %459 = vector.load %arg9[%458, %c0_149] : memref<72x128xf32, #tpu.memory_space<vmem>>, vector<8x32xf32>
      %460 = arith.select %378, %457, %459 : vector<8x32xi1>, vector<8x32xf32>
      %461 = arith.index_cast %452 : i32 to index
      %c0_150 = arith.constant 0 : index
      %462 = vector.load %arg7[%461, %c0_150] : memref<72x32xf32, #tpu.memory_space<vmem>>, vector<8x32xf32>
      tpu.vector_store %arg7[%461, %c0_150], %460 {strides = array<i32>} : memref<72x32xf32, #tpu.memory_space<vmem>>, vector<8x32xf32>,
      %c7_i32_151 = arith.constant 7 : i32
      %c8_i32_152 = arith.constant 8 : i32
      %463 = arith.muli %c7_i32_151, %c8_i32_152 : i32
      %464 = tpu.assume_multiple %463, 8 : i32
      %c8_i32_153 = arith.constant 8 : i32
      %465 = arith.subi %c8_i32_153, %c7_i32_151 : i32
      %c8_i32_154 = arith.constant 8 : i32
      %466 = arith.muli %465, %c8_i32_154 : i32
      %467 = tpu.assume_multiple %466, 8 : i32
      %468 = arith.index_cast %464 : i32 to index
      %c0_155 = arith.constant 0 : index
      %469 = vector.load %arg9[%468, %c0_155] : memref<72x128xf32, #tpu.memory_space<vmem>>, vector<8x32xf32>
      %470 = arith.index_cast %467 : i32 to index
      %c0_156 = arith.constant 0 : index
      %471 = vector.load %arg9[%470, %c0_156] : memref<72x128xf32, #tpu.memory_space<vmem>>, vector<8x32xf32>
      %472 = arith.select %378, %469, %471 : vector<8x32xi1>, vector<8x32xf32>
      %473 = arith.index_cast %464 : i32 to index
      %c0_157 = arith.constant 0 : index
      %474 = vector.load %arg7[%473, %c0_157] : memref<72x32xf32, #tpu.memory_space<vmem>>, vector<8x32xf32>
      tpu.vector_store %arg7[%473, %c0_157], %472 {strides = array<i32>} : memref<72x32xf32, #tpu.memory_space<vmem>>, vector<8x32xf32>,
      %c8_i32_158 = arith.constant 8 : i32
      %c8_i32_159 = arith.constant 8 : i32
      %475 = arith.muli %c8_i32_158, %c8_i32_159 : i32
      %476 = tpu.assume_multiple %475, 8 : i32
      %c8_i32_160 = arith.constant 8 : i32
      %477 = arith.subi %c8_i32_160, %c8_i32_158 : i32
      %c8_i32_161 = arith.constant 8 : i32
      %478 = arith.muli %477, %c8_i32_161 : i32
      %479 = tpu.assume_multiple %478, 8 : i32
      %480 = arith.index_cast %476 : i32 to index
      %c0_162 = arith.constant 0 : index
      %481 = vector.load %arg9[%480, %c0_162] : memref<72x128xf32, #tpu.memory_space<vmem>>, vector<8x32xf32>
      %482 = arith.index_cast %479 : i32 to index
      %c0_163 = arith.constant 0 : index
      %483 = vector.load %arg9[%482, %c0_163] : memref<72x128xf32, #tpu.memory_space<vmem>>, vector<8x32xf32>
      %484 = arith.select %378, %481, %483 : vector<8x32xi1>, vector<8x32xf32>
      %485 = arith.index_cast %476 : i32 to index
      %c0_164 = arith.constant 0 : index
      %486 = vector.load %arg7[%485, %c0_164] : memref<72x32xf32, #tpu.memory_space<vmem>>, vector<8x32xf32>
      tpu.vector_store %arg7[%485, %c0_164], %484 {strides = array<i32>} : memref<72x32xf32, #tpu.memory_space<vmem>>, vector<8x32xf32>,
      %c9_i32_165 = arith.constant 9 : i32
    } else {
    }
    %c0 = arith.constant 0 : index
    %c0_3 = arith.constant 0 : index
    %6 = vector.load %arg7[%c0, %c0_3] : memref<72x32xf32, #tpu.memory_space<vmem>>, vector<72x32xf32>
    %c0_4 = arith.constant 0 : index
    %c0_5 = arith.constant 0 : index
    %c0_6 = arith.constant 0 : index
    %7 = vector.load %arg2[%c0_4, %c0_5, %c0_6] : memref<1x32x768xf32, #tpu.memory_space<vmem>>, vector<1x32x768xf32>
    %8 = vector.shape_cast %7 : vector<1x32x768xf32> to vector<32x768xf32>
    %cst = arith.constant dense<0.000000e+00> : vector<72x768xf32>
    %9 = tpu.matmul %6, %8, %cst {dimension_numbers = #tpu.dot_dimension_numbers<[1], [0], [0], [1], [0, 0, 1, 1], [], []>} : vector<72x32xf32>, vector<32x768xf32>, vector<72x768xf32> -> vector<72x768xf32>
    %c0_7 = arith.constant 0 : index
    %c0_8 = arith.constant 0 : index
    %c0_9 = arith.constant 0 : index
    %10 = vector.load %arg4[%c0_7, %c0_8, %c0_9] : memref<1x1x768xf32, #tpu.memory_space<vmem>>, vector<1x1x768xf32>
    %11 = vector.shape_cast %10 : vector<1x1x768xf32> to vector<1x768xf32>
    %12 = vector.broadcast %11 : vector<1x768xf32> to vector<72x768xf32>
    %13 = arith.addf %9, %12 : vector<72x768xf32>
    %c0_10 = arith.constant 0 : index
    %c0_11 = arith.constant 0 : index
    %14 = vector.load %arg8[%c0_10, %c0_11] : memref<72x768xf32, #tpu.memory_space<vmem>>, vector<72x768xf32>
    tpu.vector_store %arg8[%c0_10, %c0_11], %13 {strides = array<i32>} : memref<72x768xf32, #tpu.memory_space<vmem>>, vector<72x768xf32>,
    %c0_12 = arith.constant 0 : index
    %c0_13 = arith.constant 0 : index
    %c0_14 = arith.constant 0 : index
    %15 = vector.load %arg3[%c0_12, %c0_13, %c0_14] : memref<1x32x384xf32, #tpu.memory_space<vmem>>, vector<1x32x384xf32>
    %16 = vector.shape_cast %15 : vector<1x32x384xf32> to vector<32x384xf32>
    %c0_15 = arith.constant 0 : index
    %c0_16 = arith.constant 0 : index
    %c0_17 = arith.constant 0 : index
    %17 = vector.load %arg5[%c0_15, %c0_16, %c0_17] : memref<1x1x128xf32, #tpu.memory_space<vmem>>, vector<1x1x128xf32>
    %18 = vector.shape_cast %17 : vector<1x1x128xf32> to vector<1x128xf32>
    %19 = vector.shape_cast %18 : vector<1x128xf32> to vector<1x128xf32>
    %20 = vector.broadcast %19 : vector<1x128xf32> to vector<8x128xf32>
    %cst_18 = arith.constant 0.000000e+00 : f32
    %21 = vector.broadcast %cst_18 : f32 to vector<8x128xf32>
    %c0_i32_19 = arith.constant 0 : i32
    %c8_i32 = arith.constant 8 : i32
    %22 = arith.muli %c0_i32_19, %c8_i32 : i32
    %23 = tpu.assume_multiple %22, 8 : i32
    %c8_i32_20 = arith.constant 8 : i32
    %24 = arith.subi %c8_i32_20, %c0_i32_19 : i32
    %c8_i32_21 = arith.constant 8 : i32
    %25 = arith.muli %24, %c8_i32_21 : i32
    %26 = tpu.assume_multiple %25, 8 : i32
    %27 = arith.index_cast %23 : i32 to index
    %c0_22 = arith.constant 0 : index
    %28 = vector.load %arg8[%27, %c0_22] : memref<72x768xf32, #tpu.memory_space<vmem>>, vector<8x384xf32>
    %29 = arith.index_cast %26 : i32 to index
    %c384 = arith.constant 384 : index
    %30 = vector.load %arg8[%29, %c384] : memref<72x768xf32, #tpu.memory_space<vmem>>, vector<8x384xf32>
    %31 = arith.addf %28, %30 : vector<8x384xf32>
    %32 = vector.extract_strided_slice %21 {offsets = [0, 0], sizes = [8, 32], strides = [1, 1]} : vector<8x128xf32> to vector<8x32xf32>
    %cst_23 = arith.constant dense<0.000000e+00> : vector<8x384xf32>
    %33 = tpu.matmul %32, %16, %cst_23 {dimension_numbers = #tpu.dot_dimension_numbers<[1], [0], [0], [1], [0, 0, 1, 1], [], []>} : vector<8x32xf32>, vector<32x384xf32>, vector<8x384xf32> -> vector<8x384xf32>
    %34 = vector.extract_strided_slice %31 {offsets = [0, 0], sizes = [8, 128], strides = [1, 1]} : vector<8x384xf32> to vector<8x128xf32>
    %35 = vector.extract_strided_slice %33 {offsets = [0, 0], sizes = [8, 128], strides = [1, 1]} : vector<8x384xf32> to vector<8x128xf32>
    %36 = arith.addf %34, %35 : vector<8x128xf32>
    %37 = arith.negf %36 : vector<8x128xf32>
    %38 = math.exp %37 : vector<8x128xf32>
    %cst_24 = arith.constant 1.000000e+00 : f32
    %39 = vector.broadcast %cst_24 : f32 to vector<8x128xf32>
    %40 = arith.addf %39, %38 : vector<8x128xf32>
    %41 = arith.divf %39, %40 : vector<8x128xf32>
    %42 = vector.extract_strided_slice %31 {offsets = [0, 128], sizes = [8, 128], strides = [1, 1]} : vector<8x384xf32> to vector<8x128xf32>
    %43 = vector.extract_strided_slice %33 {offsets = [0, 128], sizes = [8, 128], strides = [1, 1]} : vector<8x384xf32> to vector<8x128xf32>
    %44 = arith.addf %42, %43 : vector<8x128xf32>
    %45 = arith.negf %44 : vector<8x128xf32>
    %46 = math.exp %45 : vector<8x128xf32>
    %cst_25 = arith.constant 1.000000e+00 : f32
    %47 = vector.broadcast %cst_25 : f32 to vector<8x128xf32>
    %48 = arith.addf %47, %46 : vector<8x128xf32>
    %49 = arith.divf %47, %48 : vector<8x128xf32>
    %50 = vector.extract_strided_slice %31 {offsets = [0, 256], sizes = [8, 128], strides = [1, 1]} : vector<8x384xf32> to vector<8x128xf32>
    %51 = vector.extract_strided_slice %33 {offsets = [0, 256], sizes = [8, 128], strides = [1, 1]} : vector<8x384xf32> to vector<8x128xf32>
    %52 = arith.addf %51, %20 : vector<8x128xf32>
    %53 = arith.mulf %41, %52 : vector<8x128xf32>
    %54 = arith.addf %50, %53 : vector<8x128xf32>
    %55 = math.tanh %54 : vector<8x128xf32>
    %56 = arith.subf %21, %55 : vector<8x128xf32>
    %57 = arith.mulf %49, %56 : vector<8x128xf32>
    %58 = arith.addf %57, %55 : vector<8x128xf32>
    %59 = arith.index_cast %23 : i32 to index
    %c0_26 = arith.constant 0 : index
    %60 = vector.load %arg9[%59, %c0_26] : memref<72x128xf32, #tpu.memory_space<vmem>>, vector<8x128xf32>
    tpu.vector_store %arg9[%59, %c0_26], %58 {strides = array<i32>} : memref<72x128xf32, #tpu.memory_space<vmem>>, vector<8x128xf32>,
    %c1_i32 = arith.constant 1 : i32
    %c8_i32_27 = arith.constant 8 : i32
    %61 = arith.muli %c1_i32, %c8_i32_27 : i32
    %62 = tpu.assume_multiple %61, 8 : i32
    %c8_i32_28 = arith.constant 8 : i32
    %63 = arith.subi %c8_i32_28, %c1_i32 : i32
    %c8_i32_29 = arith.constant 8 : i32
    %64 = arith.muli %63, %c8_i32_29 : i32
    %65 = tpu.assume_multiple %64, 8 : i32
    %66 = arith.index_cast %62 : i32 to index
    %c0_30 = arith.constant 0 : index
    %67 = vector.load %arg8[%66, %c0_30] : memref<72x768xf32, #tpu.memory_space<vmem>>, vector<8x384xf32>
    %68 = arith.index_cast %65 : i32 to index
    %c384_31 = arith.constant 384 : index
    %69 = vector.load %arg8[%68, %c384_31] : memref<72x768xf32, #tpu.memory_space<vmem>>, vector<8x384xf32>
    %70 = arith.addf %67, %69 : vector<8x384xf32>
    %71 = vector.extract_strided_slice %58 {offsets = [0, 0], sizes = [8, 32], strides = [1, 1]} : vector<8x128xf32> to vector<8x32xf32>
    %cst_32 = arith.constant dense<0.000000e+00> : vector<8x384xf32>
    %72 = tpu.matmul %71, %16, %cst_32 {dimension_numbers = #tpu.dot_dimension_numbers<[1], [0], [0], [1], [0, 0, 1, 1], [], []>} : vector<8x32xf32>, vector<32x384xf32>, vector<8x384xf32> -> vector<8x384xf32>
    %73 = vector.extract_strided_slice %70 {offsets = [0, 0], sizes = [8, 128], strides = [1, 1]} : vector<8x384xf32> to vector<8x128xf32>
    %74 = vector.extract_strided_slice %72 {offsets = [0, 0], sizes = [8, 128], strides = [1, 1]} : vector<8x384xf32> to vector<8x128xf32>
    %75 = arith.addf %73, %74 : vector<8x128xf32>
    %76 = arith.negf %75 : vector<8x128xf32>
    %77 = math.exp %76 : vector<8x128xf32>
    %cst_33 = arith.constant 1.000000e+00 : f32
    %78 = vector.broadcast %cst_33 : f32 to vector<8x128xf32>
    %79 = arith.addf %78, %77 : vector<8x128xf32>
    %80 = arith.divf %78, %79 : vector<8x128xf32>
    %81 = vector.extract_strided_slice %70 {offsets = [0, 128], sizes = [8, 128], strides = [1, 1]} : vector<8x384xf32> to vector<8x128xf32>
    %82 = vector.extract_strided_slice %72 {offsets = [0, 128], sizes = [8, 128], strides = [1, 1]} : vector<8x384xf32> to vector<8x128xf32>
    %83 = arith.addf %81, %82 : vector<8x128xf32>
    %84 = arith.negf %83 : vector<8x128xf32>
    %85 = math.exp %84 : vector<8x128xf32>
    %cst_34 = arith.constant 1.000000e+00 : f32
    %86 = vector.broadcast %cst_34 : f32 to vector<8x128xf32>
    %87 = arith.addf %86, %85 : vector<8x128xf32>
    %88 = arith.divf %86, %87 : vector<8x128xf32>
    %89 = vector.extract_strided_slice %70 {offsets = [0, 256], sizes = [8, 128], strides = [1, 1]} : vector<8x384xf32> to vector<8x128xf32>
    %90 = vector.extract_strided_slice %72 {offsets = [0, 256], sizes = [8, 128], strides = [1, 1]} : vector<8x384xf32> to vector<8x128xf32>
    %91 = arith.addf %90, %20 : vector<8x128xf32>
    %92 = arith.mulf %80, %91 : vector<8x128xf32>
    %93 = arith.addf %89, %92 : vector<8x128xf32>
    %94 = math.tanh %93 : vector<8x128xf32>
    %95 = arith.subf %58, %94 : vector<8x128xf32>
    %96 = arith.mulf %88, %95 : vector<8x128xf32>
    %97 = arith.addf %96, %94 : vector<8x128xf32>
    %98 = arith.index_cast %62 : i32 to index
    %c0_35 = arith.constant 0 : index
    %99 = vector.load %arg9[%98, %c0_35] : memref<72x128xf32, #tpu.memory_space<vmem>>, vector<8x128xf32>
    tpu.vector_store %arg9[%98, %c0_35], %97 {strides = array<i32>} : memref<72x128xf32, #tpu.memory_space<vmem>>, vector<8x128xf32>,
    %c2_i32 = arith.constant 2 : i32
    %c8_i32_36 = arith.constant 8 : i32
    %100 = arith.muli %c2_i32, %c8_i32_36 : i32
    %101 = tpu.assume_multiple %100, 8 : i32
    %c8_i32_37 = arith.constant 8 : i32
    %102 = arith.subi %c8_i32_37, %c2_i32 : i32
    %c8_i32_38 = arith.constant 8 : i32
    %103 = arith.muli %102, %c8_i32_38 : i32
    %104 = tpu.assume_multiple %103, 8 : i32
    %105 = arith.index_cast %101 : i32 to index
    %c0_39 = arith.constant 0 : index
    %106 = vector.load %arg8[%105, %c0_39] : memref<72x768xf32, #tpu.memory_space<vmem>>, vector<8x384xf32>
    %107 = arith.index_cast %104 : i32 to index
    %c384_40 = arith.constant 384 : index
    %108 = vector.load %arg8[%107, %c384_40] : memref<72x768xf32, #tpu.memory_space<vmem>>, vector<8x384xf32>
    %109 = arith.addf %106, %108 : vector<8x384xf32>
    %110 = vector.extract_strided_slice %97 {offsets = [0, 0], sizes = [8, 32], strides = [1, 1]} : vector<8x128xf32> to vector<8x32xf32>
    %cst_41 = arith.constant dense<0.000000e+00> : vector<8x384xf32>
    %111 = tpu.matmul %110, %16, %cst_41 {dimension_numbers = #tpu.dot_dimension_numbers<[1], [0], [0], [1], [0, 0, 1, 1], [], []>} : vector<8x32xf32>, vector<32x384xf32>, vector<8x384xf32> -> vector<8x384xf32>
    %112 = vector.extract_strided_slice %109 {offsets = [0, 0], sizes = [8, 128], strides = [1, 1]} : vector<8x384xf32> to vector<8x128xf32>
    %113 = vector.extract_strided_slice %111 {offsets = [0, 0], sizes = [8, 128], strides = [1, 1]} : vector<8x384xf32> to vector<8x128xf32>
    %114 = arith.addf %112, %113 : vector<8x128xf32>
    %115 = arith.negf %114 : vector<8x128xf32>
    %116 = math.exp %115 : vector<8x128xf32>
    %cst_42 = arith.constant 1.000000e+00 : f32
    %117 = vector.broadcast %cst_42 : f32 to vector<8x128xf32>
    %118 = arith.addf %117, %116 : vector<8x128xf32>
    %119 = arith.divf %117, %118 : vector<8x128xf32>
    %120 = vector.extract_strided_slice %109 {offsets = [0, 128], sizes = [8, 128], strides = [1, 1]} : vector<8x384xf32> to vector<8x128xf32>
    %121 = vector.extract_strided_slice %111 {offsets = [0, 128], sizes = [8, 128], strides = [1, 1]} : vector<8x384xf32> to vector<8x128xf32>
    %122 = arith.addf %120, %121 : vector<8x128xf32>
    %123 = arith.negf %122 : vector<8x128xf32>
    %124 = math.exp %123 : vector<8x128xf32>
    %cst_43 = arith.constant 1.000000e+00 : f32
    %125 = vector.broadcast %cst_43 : f32 to vector<8x128xf32>
    %126 = arith.addf %125, %124 : vector<8x128xf32>
    %127 = arith.divf %125, %126 : vector<8x128xf32>
    %128 = vector.extract_strided_slice %109 {offsets = [0, 256], sizes = [8, 128], strides = [1, 1]} : vector<8x384xf32> to vector<8x128xf32>
    %129 = vector.extract_strided_slice %111 {offsets = [0, 256], sizes = [8, 128], strides = [1, 1]} : vector<8x384xf32> to vector<8x128xf32>
    %130 = arith.addf %129, %20 : vector<8x128xf32>
    %131 = arith.mulf %119, %130 : vector<8x128xf32>
    %132 = arith.addf %128, %131 : vector<8x128xf32>
    %133 = math.tanh %132 : vector<8x128xf32>
    %134 = arith.subf %97, %133 : vector<8x128xf32>
    %135 = arith.mulf %127, %134 : vector<8x128xf32>
    %136 = arith.addf %135, %133 : vector<8x128xf32>
    %137 = arith.index_cast %101 : i32 to index
    %c0_44 = arith.constant 0 : index
    %138 = vector.load %arg9[%137, %c0_44] : memref<72x128xf32, #tpu.memory_space<vmem>>, vector<8x128xf32>
    tpu.vector_store %arg9[%137, %c0_44], %136 {strides = array<i32>} : memref<72x128xf32, #tpu.memory_space<vmem>>, vector<8x128xf32>,
    %c3_i32 = arith.constant 3 : i32
    %c8_i32_45 = arith.constant 8 : i32
    %139 = arith.muli %c3_i32, %c8_i32_45 : i32
    %140 = tpu.assume_multiple %139, 8 : i32
    %c8_i32_46 = arith.constant 8 : i32
    %141 = arith.subi %c8_i32_46, %c3_i32 : i32
    %c8_i32_47 = arith.constant 8 : i32
    %142 = arith.muli %141, %c8_i32_47 : i32
    %143 = tpu.assume_multiple %142, 8 : i32
    %144 = arith.index_cast %140 : i32 to index
    %c0_48 = arith.constant 0 : index
    %145 = vector.load %arg8[%144, %c0_48] : memref<72x768xf32, #tpu.memory_space<vmem>>, vector<8x384xf32>
    %146 = arith.index_cast %143 : i32 to index
    %c384_49 = arith.constant 384 : index
    %147 = vector.load %arg8[%146, %c384_49] : memref<72x768xf32, #tpu.memory_space<vmem>>, vector<8x384xf32>
    %148 = arith.addf %145, %147 : vector<8x384xf32>
    %149 = vector.extract_strided_slice %136 {offsets = [0, 0], sizes = [8, 32], strides = [1, 1]} : vector<8x128xf32> to vector<8x32xf32>
    %cst_50 = arith.constant dense<0.000000e+00> : vector<8x384xf32>
    %150 = tpu.matmul %149, %16, %cst_50 {dimension_numbers = #tpu.dot_dimension_numbers<[1], [0], [0], [1], [0, 0, 1, 1], [], []>} : vector<8x32xf32>, vector<32x384xf32>, vector<8x384xf32> -> vector<8x384xf32>
    %151 = vector.extract_strided_slice %148 {offsets = [0, 0], sizes = [8, 128], strides = [1, 1]} : vector<8x384xf32> to vector<8x128xf32>
    %152 = vector.extract_strided_slice %150 {offsets = [0, 0], sizes = [8, 128], strides = [1, 1]} : vector<8x384xf32> to vector<8x128xf32>
    %153 = arith.addf %151, %152 : vector<8x128xf32>
    %154 = arith.negf %153 : vector<8x128xf32>
    %155 = math.exp %154 : vector<8x128xf32>
    %cst_51 = arith.constant 1.000000e+00 : f32
    %156 = vector.broadcast %cst_51 : f32 to vector<8x128xf32>
    %157 = arith.addf %156, %155 : vector<8x128xf32>
    %158 = arith.divf %156, %157 : vector<8x128xf32>
    %159 = vector.extract_strided_slice %148 {offsets = [0, 128], sizes = [8, 128], strides = [1, 1]} : vector<8x384xf32> to vector<8x128xf32>
    %160 = vector.extract_strided_slice %150 {offsets = [0, 128], sizes = [8, 128], strides = [1, 1]} : vector<8x384xf32> to vector<8x128xf32>
    %161 = arith.addf %159, %160 : vector<8x128xf32>
    %162 = arith.negf %161 : vector<8x128xf32>
    %163 = math.exp %162 : vector<8x128xf32>
    %cst_52 = arith.constant 1.000000e+00 : f32
    %164 = vector.broadcast %cst_52 : f32 to vector<8x128xf32>
    %165 = arith.addf %164, %163 : vector<8x128xf32>
    %166 = arith.divf %164, %165 : vector<8x128xf32>
    %167 = vector.extract_strided_slice %148 {offsets = [0, 256], sizes = [8, 128], strides = [1, 1]} : vector<8x384xf32> to vector<8x128xf32>
    %168 = vector.extract_strided_slice %150 {offsets = [0, 256], sizes = [8, 128], strides = [1, 1]} : vector<8x384xf32> to vector<8x128xf32>
    %169 = arith.addf %168, %20 : vector<8x128xf32>
    %170 = arith.mulf %158, %169 : vector<8x128xf32>
    %171 = arith.addf %167, %170 : vector<8x128xf32>
    %172 = math.tanh %171 : vector<8x128xf32>
    %173 = arith.subf %136, %172 : vector<8x128xf32>
    %174 = arith.mulf %166, %173 : vector<8x128xf32>
    %175 = arith.addf %174, %172 : vector<8x128xf32>
    %176 = arith.index_cast %140 : i32 to index
    %c0_53 = arith.constant 0 : index
    %177 = vector.load %arg9[%176, %c0_53] : memref<72x128xf32, #tpu.memory_space<vmem>>, vector<8x128xf32>
    tpu.vector_store %arg9[%176, %c0_53], %175 {strides = array<i32>} : memref<72x128xf32, #tpu.memory_space<vmem>>, vector<8x128xf32>,
    %c4_i32 = arith.constant 4 : i32
    %c8_i32_54 = arith.constant 8 : i32
    %178 = arith.muli %c4_i32, %c8_i32_54 : i32
    %179 = tpu.assume_multiple %178, 8 : i32
    %c8_i32_55 = arith.constant 8 : i32
    %180 = arith.subi %c8_i32_55, %c4_i32 : i32
    %c8_i32_56 = arith.constant 8 : i32
    %181 = arith.muli %180, %c8_i32_56 : i32
    %182 = tpu.assume_multiple %181, 8 : i32
    %183 = arith.index_cast %179 : i32 to index
    %c0_57 = arith.constant 0 : index
    %184 = vector.load %arg8[%183, %c0_57] : memref<72x768xf32, #tpu.memory_space<vmem>>, vector<8x384xf32>
    %185 = arith.index_cast %182 : i32 to index
    %c384_58 = arith.constant 384 : index
    %186 = vector.load %arg8[%185, %c384_58] : memref<72x768xf32, #tpu.memory_space<vmem>>, vector<8x384xf32>
    %187 = arith.addf %184, %186 : vector<8x384xf32>
    %188 = vector.extract_strided_slice %175 {offsets = [0, 0], sizes = [8, 32], strides = [1, 1]} : vector<8x128xf32> to vector<8x32xf32>
    %cst_59 = arith.constant dense<0.000000e+00> : vector<8x384xf32>
    %189 = tpu.matmul %188, %16, %cst_59 {dimension_numbers = #tpu.dot_dimension_numbers<[1], [0], [0], [1], [0, 0, 1, 1], [], []>} : vector<8x32xf32>, vector<32x384xf32>, vector<8x384xf32> -> vector<8x384xf32>
    %190 = vector.extract_strided_slice %187 {offsets = [0, 0], sizes = [8, 128], strides = [1, 1]} : vector<8x384xf32> to vector<8x128xf32>
    %191 = vector.extract_strided_slice %189 {offsets = [0, 0], sizes = [8, 128], strides = [1, 1]} : vector<8x384xf32> to vector<8x128xf32>
    %192 = arith.addf %190, %191 : vector<8x128xf32>
    %193 = arith.negf %192 : vector<8x128xf32>
    %194 = math.exp %193 : vector<8x128xf32>
    %cst_60 = arith.constant 1.000000e+00 : f32
    %195 = vector.broadcast %cst_60 : f32 to vector<8x128xf32>
    %196 = arith.addf %195, %194 : vector<8x128xf32>
    %197 = arith.divf %195, %196 : vector<8x128xf32>
    %198 = vector.extract_strided_slice %187 {offsets = [0, 128], sizes = [8, 128], strides = [1, 1]} : vector<8x384xf32> to vector<8x128xf32>
    %199 = vector.extract_strided_slice %189 {offsets = [0, 128], sizes = [8, 128], strides = [1, 1]} : vector<8x384xf32> to vector<8x128xf32>
    %200 = arith.addf %198, %199 : vector<8x128xf32>
    %201 = arith.negf %200 : vector<8x128xf32>
    %202 = math.exp %201 : vector<8x128xf32>
    %cst_61 = arith.constant 1.000000e+00 : f32
    %203 = vector.broadcast %cst_61 : f32 to vector<8x128xf32>
    %204 = arith.addf %203, %202 : vector<8x128xf32>
    %205 = arith.divf %203, %204 : vector<8x128xf32>
    %206 = vector.extract_strided_slice %187 {offsets = [0, 256], sizes = [8, 128], strides = [1, 1]} : vector<8x384xf32> to vector<8x128xf32>
    %207 = vector.extract_strided_slice %189 {offsets = [0, 256], sizes = [8, 128], strides = [1, 1]} : vector<8x384xf32> to vector<8x128xf32>
    %208 = arith.addf %207, %20 : vector<8x128xf32>
    %209 = arith.mulf %197, %208 : vector<8x128xf32>
    %210 = arith.addf %206, %209 : vector<8x128xf32>
    %211 = math.tanh %210 : vector<8x128xf32>
    %212 = arith.subf %175, %211 : vector<8x128xf32>
    %213 = arith.mulf %205, %212 : vector<8x128xf32>
    %214 = arith.addf %213, %211 : vector<8x128xf32>
    %215 = arith.index_cast %179 : i32 to index
    %c0_62 = arith.constant 0 : index
    %216 = vector.load %arg9[%215, %c0_62] : memref<72x128xf32, #tpu.memory_space<vmem>>, vector<8x128xf32>
    tpu.vector_store %arg9[%215, %c0_62], %214 {strides = array<i32>} : memref<72x128xf32, #tpu.memory_space<vmem>>, vector<8x128xf32>,
    %c5_i32 = arith.constant 5 : i32
    %c8_i32_63 = arith.constant 8 : i32
    %217 = arith.muli %c5_i32, %c8_i32_63 : i32
    %218 = tpu.assume_multiple %217, 8 : i32
    %c8_i32_64 = arith.constant 8 : i32
    %219 = arith.subi %c8_i32_64, %c5_i32 : i32
    %c8_i32_65 = arith.constant 8 : i32
    %220 = arith.muli %219, %c8_i32_65 : i32
    %221 = tpu.assume_multiple %220, 8 : i32
    %222 = arith.index_cast %218 : i32 to index
    %c0_66 = arith.constant 0 : index
    %223 = vector.load %arg8[%222, %c0_66] : memref<72x768xf32, #tpu.memory_space<vmem>>, vector<8x384xf32>
    %224 = arith.index_cast %221 : i32 to index
    %c384_67 = arith.constant 384 : index
    %225 = vector.load %arg8[%224, %c384_67] : memref<72x768xf32, #tpu.memory_space<vmem>>, vector<8x384xf32>
    %226 = arith.addf %223, %225 : vector<8x384xf32>
    %227 = vector.extract_strided_slice %214 {offsets = [0, 0], sizes = [8, 32], strides = [1, 1]} : vector<8x128xf32> to vector<8x32xf32>
    %cst_68 = arith.constant dense<0.000000e+00> : vector<8x384xf32>
    %228 = tpu.matmul %227, %16, %cst_68 {dimension_numbers = #tpu.dot_dimension_numbers<[1], [0], [0], [1], [0, 0, 1, 1], [], []>} : vector<8x32xf32>, vector<32x384xf32>, vector<8x384xf32> -> vector<8x384xf32>
    %229 = vector.extract_strided_slice %226 {offsets = [0, 0], sizes = [8, 128], strides = [1, 1]} : vector<8x384xf32> to vector<8x128xf32>
    %230 = vector.extract_strided_slice %228 {offsets = [0, 0], sizes = [8, 128], strides = [1, 1]} : vector<8x384xf32> to vector<8x128xf32>
    %231 = arith.addf %229, %230 : vector<8x128xf32>
    %232 = arith.negf %231 : vector<8x128xf32>
    %233 = math.exp %232 : vector<8x128xf32>
    %cst_69 = arith.constant 1.000000e+00 : f32
    %234 = vector.broadcast %cst_69 : f32 to vector<8x128xf32>
    %235 = arith.addf %234, %233 : vector<8x128xf32>
    %236 = arith.divf %234, %235 : vector<8x128xf32>
    %237 = vector.extract_strided_slice %226 {offsets = [0, 128], sizes = [8, 128], strides = [1, 1]} : vector<8x384xf32> to vector<8x128xf32>
    %238 = vector.extract_strided_slice %228 {offsets = [0, 128], sizes = [8, 128], strides = [1, 1]} : vector<8x384xf32> to vector<8x128xf32>
    %239 = arith.addf %237, %238 : vector<8x128xf32>
    %240 = arith.negf %239 : vector<8x128xf32>
    %241 = math.exp %240 : vector<8x128xf32>
    %cst_70 = arith.constant 1.000000e+00 : f32
    %242 = vector.broadcast %cst_70 : f32 to vector<8x128xf32>
    %243 = arith.addf %242, %241 : vector<8x128xf32>
    %244 = arith.divf %242, %243 : vector<8x128xf32>
    %245 = vector.extract_strided_slice %226 {offsets = [0, 256], sizes = [8, 128], strides = [1, 1]} : vector<8x384xf32> to vector<8x128xf32>
    %246 = vector.extract_strided_slice %228 {offsets = [0, 256], sizes = [8, 128], strides = [1, 1]} : vector<8x384xf32> to vector<8x128xf32>
    %247 = arith.addf %246, %20 : vector<8x128xf32>
    %248 = arith.mulf %236, %247 : vector<8x128xf32>
    %249 = arith.addf %245, %248 : vector<8x128xf32>
    %250 = math.tanh %249 : vector<8x128xf32>
    %251 = arith.subf %214, %250 : vector<8x128xf32>
    %252 = arith.mulf %244, %251 : vector<8x128xf32>
    %253 = arith.addf %252, %250 : vector<8x128xf32>
    %254 = arith.index_cast %218 : i32 to index
    %c0_71 = arith.constant 0 : index
    %255 = vector.load %arg9[%254, %c0_71] : memref<72x128xf32, #tpu.memory_space<vmem>>, vector<8x128xf32>
    tpu.vector_store %arg9[%254, %c0_71], %253 {strides = array<i32>} : memref<72x128xf32, #tpu.memory_space<vmem>>, vector<8x128xf32>,
    %c6_i32 = arith.constant 6 : i32
    %c8_i32_72 = arith.constant 8 : i32
    %256 = arith.muli %c6_i32, %c8_i32_72 : i32
    %257 = tpu.assume_multiple %256, 8 : i32
    %c8_i32_73 = arith.constant 8 : i32
    %258 = arith.subi %c8_i32_73, %c6_i32 : i32
    %c8_i32_74 = arith.constant 8 : i32
    %259 = arith.muli %258, %c8_i32_74 : i32
    %260 = tpu.assume_multiple %259, 8 : i32
    %261 = arith.index_cast %257 : i32 to index
    %c0_75 = arith.constant 0 : index
    %262 = vector.load %arg8[%261, %c0_75] : memref<72x768xf32, #tpu.memory_space<vmem>>, vector<8x384xf32>
    %263 = arith.index_cast %260 : i32 to index
    %c384_76 = arith.constant 384 : index
    %264 = vector.load %arg8[%263, %c384_76] : memref<72x768xf32, #tpu.memory_space<vmem>>, vector<8x384xf32>
    %265 = arith.addf %262, %264 : vector<8x384xf32>
    %266 = vector.extract_strided_slice %253 {offsets = [0, 0], sizes = [8, 32], strides = [1, 1]} : vector<8x128xf32> to vector<8x32xf32>
    %cst_77 = arith.constant dense<0.000000e+00> : vector<8x384xf32>
    %267 = tpu.matmul %266, %16, %cst_77 {dimension_numbers = #tpu.dot_dimension_numbers<[1], [0], [0], [1], [0, 0, 1, 1], [], []>} : vector<8x32xf32>, vector<32x384xf32>, vector<8x384xf32> -> vector<8x384xf32>
    %268 = vector.extract_strided_slice %265 {offsets = [0, 0], sizes = [8, 128], strides = [1, 1]} : vector<8x384xf32> to vector<8x128xf32>
    %269 = vector.extract_strided_slice %267 {offsets = [0, 0], sizes = [8, 128], strides = [1, 1]} : vector<8x384xf32> to vector<8x128xf32>
    %270 = arith.addf %268, %269 : vector<8x128xf32>
    %271 = arith.negf %270 : vector<8x128xf32>
    %272 = math.exp %271 : vector<8x128xf32>
    %cst_78 = arith.constant 1.000000e+00 : f32
    %273 = vector.broadcast %cst_78 : f32 to vector<8x128xf32>
    %274 = arith.addf %273, %272 : vector<8x128xf32>
    %275 = arith.divf %273, %274 : vector<8x128xf32>
    %276 = vector.extract_strided_slice %265 {offsets = [0, 128], sizes = [8, 128], strides = [1, 1]} : vector<8x384xf32> to vector<8x128xf32>
    %277 = vector.extract_strided_slice %267 {offsets = [0, 128], sizes = [8, 128], strides = [1, 1]} : vector<8x384xf32> to vector<8x128xf32>
    %278 = arith.addf %276, %277 : vector<8x128xf32>
    %279 = arith.negf %278 : vector<8x128xf32>
    %280 = math.exp %279 : vector<8x128xf32>
    %cst_79 = arith.constant 1.000000e+00 : f32
    %281 = vector.broadcast %cst_79 : f32 to vector<8x128xf32>
    %282 = arith.addf %281, %280 : vector<8x128xf32>
    %283 = arith.divf %281, %282 : vector<8x128xf32>
    %284 = vector.extract_strided_slice %265 {offsets = [0, 256], sizes = [8, 128], strides = [1, 1]} : vector<8x384xf32> to vector<8x128xf32>
    %285 = vector.extract_strided_slice %267 {offsets = [0, 256], sizes = [8, 128], strides = [1, 1]} : vector<8x384xf32> to vector<8x128xf32>
    %286 = arith.addf %285, %20 : vector<8x128xf32>
    %287 = arith.mulf %275, %286 : vector<8x128xf32>
    %288 = arith.addf %284, %287 : vector<8x128xf32>
    %289 = math.tanh %288 : vector<8x128xf32>
    %290 = arith.subf %253, %289 : vector<8x128xf32>
    %291 = arith.mulf %283, %290 : vector<8x128xf32>
    %292 = arith.addf %291, %289 : vector<8x128xf32>
    %293 = arith.index_cast %257 : i32 to index
    %c0_80 = arith.constant 0 : index
    %294 = vector.load %arg9[%293, %c0_80] : memref<72x128xf32, #tpu.memory_space<vmem>>, vector<8x128xf32>
    tpu.vector_store %arg9[%293, %c0_80], %292 {strides = array<i32>} : memref<72x128xf32, #tpu.memory_space<vmem>>, vector<8x128xf32>,
    %c7_i32 = arith.constant 7 : i32
    %c8_i32_81 = arith.constant 8 : i32
    %295 = arith.muli %c7_i32, %c8_i32_81 : i32
    %296 = tpu.assume_multiple %295, 8 : i32
    %c8_i32_82 = arith.constant 8 : i32
    %297 = arith.subi %c8_i32_82, %c7_i32 : i32
    %c8_i32_83 = arith.constant 8 : i32
    %298 = arith.muli %297, %c8_i32_83 : i32
    %299 = tpu.assume_multiple %298, 8 : i32
    %300 = arith.index_cast %296 : i32 to index
    %c0_84 = arith.constant 0 : index
    %301 = vector.load %arg8[%300, %c0_84] : memref<72x768xf32, #tpu.memory_space<vmem>>, vector<8x384xf32>
    %302 = arith.index_cast %299 : i32 to index
    %c384_85 = arith.constant 384 : index
    %303 = vector.load %arg8[%302, %c384_85] : memref<72x768xf32, #tpu.memory_space<vmem>>, vector<8x384xf32>
    %304 = arith.addf %301, %303 : vector<8x384xf32>
    %305 = vector.extract_strided_slice %292 {offsets = [0, 0], sizes = [8, 32], strides = [1, 1]} : vector<8x128xf32> to vector<8x32xf32>
    %cst_86 = arith.constant dense<0.000000e+00> : vector<8x384xf32>
    %306 = tpu.matmul %305, %16, %cst_86 {dimension_numbers = #tpu.dot_dimension_numbers<[1], [0], [0], [1], [0, 0, 1, 1], [], []>} : vector<8x32xf32>, vector<32x384xf32>, vector<8x384xf32> -> vector<8x384xf32>
    %307 = vector.extract_strided_slice %304 {offsets = [0, 0], sizes = [8, 128], strides = [1, 1]} : vector<8x384xf32> to vector<8x128xf32>
    %308 = vector.extract_strided_slice %306 {offsets = [0, 0], sizes = [8, 128], strides = [1, 1]} : vector<8x384xf32> to vector<8x128xf32>
    %309 = arith.addf %307, %308 : vector<8x128xf32>
    %310 = arith.negf %309 : vector<8x128xf32>
    %311 = math.exp %310 : vector<8x128xf32>
    %cst_87 = arith.constant 1.000000e+00 : f32
    %312 = vector.broadcast %cst_87 : f32 to vector<8x128xf32>
    %313 = arith.addf %312, %311 : vector<8x128xf32>
    %314 = arith.divf %312, %313 : vector<8x128xf32>
    %315 = vector.extract_strided_slice %304 {offsets = [0, 128], sizes = [8, 128], strides = [1, 1]} : vector<8x384xf32> to vector<8x128xf32>
    %316 = vector.extract_strided_slice %306 {offsets = [0, 128], sizes = [8, 128], strides = [1, 1]} : vector<8x384xf32> to vector<8x128xf32>
    %317 = arith.addf %315, %316 : vector<8x128xf32>
    %318 = arith.negf %317 : vector<8x128xf32>
    %319 = math.exp %318 : vector<8x128xf32>
    %cst_88 = arith.constant 1.000000e+00 : f32
    %320 = vector.broadcast %cst_88 : f32 to vector<8x128xf32>
    %321 = arith.addf %320, %319 : vector<8x128xf32>
    %322 = arith.divf %320, %321 : vector<8x128xf32>
    %323 = vector.extract_strided_slice %304 {offsets = [0, 256], sizes = [8, 128], strides = [1, 1]} : vector<8x384xf32> to vector<8x128xf32>
    %324 = vector.extract_strided_slice %306 {offsets = [0, 256], sizes = [8, 128], strides = [1, 1]} : vector<8x384xf32> to vector<8x128xf32>
    %325 = arith.addf %324, %20 : vector<8x128xf32>
    %326 = arith.mulf %314, %325 : vector<8x128xf32>
    %327 = arith.addf %323, %326 : vector<8x128xf32>
    %328 = math.tanh %327 : vector<8x128xf32>
    %329 = arith.subf %292, %328 : vector<8x128xf32>
    %330 = arith.mulf %322, %329 : vector<8x128xf32>
    %331 = arith.addf %330, %328 : vector<8x128xf32>
    %332 = arith.index_cast %296 : i32 to index
    %c0_89 = arith.constant 0 : index
    %333 = vector.load %arg9[%332, %c0_89] : memref<72x128xf32, #tpu.memory_space<vmem>>, vector<8x128xf32>
    tpu.vector_store %arg9[%332, %c0_89], %331 {strides = array<i32>} : memref<72x128xf32, #tpu.memory_space<vmem>>, vector<8x128xf32>,
    %c8_i32_90 = arith.constant 8 : i32
    %c8_i32_91 = arith.constant 8 : i32
    %334 = arith.muli %c8_i32_90, %c8_i32_91 : i32
    %335 = tpu.assume_multiple %334, 8 : i32
    %c8_i32_92 = arith.constant 8 : i32
    %336 = arith.subi %c8_i32_92, %c8_i32_90 : i32
    %c8_i32_93 = arith.constant 8 : i32
    %337 = arith.muli %336, %c8_i32_93 : i32
    %338 = tpu.assume_multiple %337, 8 : i32
    %339 = arith.index_cast %335 : i32 to index
    %c0_94 = arith.constant 0 : index
    %340 = vector.load %arg8[%339, %c0_94] : memref<72x768xf32, #tpu.memory_space<vmem>>, vector<8x384xf32>
    %341 = arith.index_cast %338 : i32 to index
    %c384_95 = arith.constant 384 : index
    %342 = vector.load %arg8[%341, %c384_95] : memref<72x768xf32, #tpu.memory_space<vmem>>, vector<8x384xf32>
    %343 = arith.addf %340, %342 : vector<8x384xf32>
    %344 = vector.extract_strided_slice %331 {offsets = [0, 0], sizes = [8, 32], strides = [1, 1]} : vector<8x128xf32> to vector<8x32xf32>
    %cst_96 = arith.constant dense<0.000000e+00> : vector<8x384xf32>
    %345 = tpu.matmul %344, %16, %cst_96 {dimension_numbers = #tpu.dot_dimension_numbers<[1], [0], [0], [1], [0, 0, 1, 1], [], []>} : vector<8x32xf32>, vector<32x384xf32>, vector<8x384xf32> -> vector<8x384xf32>
    %346 = vector.extract_strided_slice %343 {offsets = [0, 0], sizes = [8, 128], strides = [1, 1]} : vector<8x384xf32> to vector<8x128xf32>
    %347 = vector.extract_strided_slice %345 {offsets = [0, 0], sizes = [8, 128], strides = [1, 1]} : vector<8x384xf32> to vector<8x128xf32>
    %348 = arith.addf %346, %347 : vector<8x128xf32>
    %349 = arith.negf %348 : vector<8x128xf32>
    %350 = math.exp %349 : vector<8x128xf32>
    %cst_97 = arith.constant 1.000000e+00 : f32
    %351 = vector.broadcast %cst_97 : f32 to vector<8x128xf32>
    %352 = arith.addf %351, %350 : vector<8x128xf32>
    %353 = arith.divf %351, %352 : vector<8x128xf32>
    %354 = vector.extract_strided_slice %343 {offsets = [0, 128], sizes = [8, 128], strides = [1, 1]} : vector<8x384xf32> to vector<8x128xf32>
    %355 = vector.extract_strided_slice %345 {offsets = [0, 128], sizes = [8, 128], strides = [1, 1]} : vector<8x384xf32> to vector<8x128xf32>
    %356 = arith.addf %354, %355 : vector<8x128xf32>
    %357 = arith.negf %356 : vector<8x128xf32>
    %358 = math.exp %357 : vector<8x128xf32>
    %cst_98 = arith.constant 1.000000e+00 : f32
    %359 = vector.broadcast %cst_98 : f32 to vector<8x128xf32>
    %360 = arith.addf %359, %358 : vector<8x128xf32>
    %361 = arith.divf %359, %360 : vector<8x128xf32>
    %362 = vector.extract_strided_slice %343 {offsets = [0, 256], sizes = [8, 128], strides = [1, 1]} : vector<8x384xf32> to vector<8x128xf32>
    %363 = vector.extract_strided_slice %345 {offsets = [0, 256], sizes = [8, 128], strides = [1, 1]} : vector<8x384xf32> to vector<8x128xf32>
    %364 = arith.addf %363, %20 : vector<8x128xf32>
    %365 = arith.mulf %353, %364 : vector<8x128xf32>
    %366 = arith.addf %362, %365 : vector<8x128xf32>
    %367 = math.tanh %366 : vector<8x128xf32>
    %368 = arith.subf %331, %367 : vector<8x128xf32>
    %369 = arith.mulf %361, %368 : vector<8x128xf32>
    %370 = arith.addf %369, %367 : vector<8x128xf32>
    %371 = arith.index_cast %335 : i32 to index
    %c0_99 = arith.constant 0 : index
    %372 = vector.load %arg9[%371, %c0_99] : memref<72x128xf32, #tpu.memory_space<vmem>>, vector<8x128xf32>
    tpu.vector_store %arg9[%371, %c0_99], %370 {strides = array<i32>} : memref<72x128xf32, #tpu.memory_space<vmem>>, vector<8x128xf32>,
    %c9_i32 = arith.constant 9 : i32
    %c1_i32_100 = arith.constant 1 : i32
    %373 = arith.cmpi eq, %arg0, %c1_i32_100 : i32
    %374 = arith.extui %373 : i1 to i32
    %c0_i32_101 = arith.constant 0 : i32
    %375 = arith.cmpi ne, %374, %c0_i32_101 : i32
    scf.if %375 {
      %c0_102 = arith.constant 0 : index
      %c0_103 = arith.constant 0 : index
      %376 = vector.load %arg6[%c0_102, %c0_103] : memref<8x128xf32, #tpu.memory_space<vmem>>, vector<8x128xf32>
      tpu.vector_store %arg6[%c0_102, %c0_103], %370 {strides = array<i32>} : memref<8x128xf32, #tpu.memory_space<vmem>>, vector<8x128xf32>,
    } else {
    }
    return
  }
  func.func @transform_0(%arg0: i32) -> (i32, i32) {
    %c0_i32 = arith.constant 0 : i32
    %c0_i32_0 = arith.constant 0 : i32
    %c0_i32_1 = arith.constant 0 : i32
    return %c0_i32, %c0_i32_0 : i32, i32
  }
  func.func @transform_1(%arg0: i32) -> (i32, i32, i32) {
    %c0_i32 = arith.constant 0 : i32
    %c0_i32_0 = arith.constant 0 : i32
    %c0_i32_1 = arith.constant 0 : i32
    return %arg0, %c0_i32, %c0_i32_0 : i32, i32, i32
  }
  func.func @transform_2(%arg0: i32) -> (i32, i32, i32) {
    %c0_i32 = arith.constant 0 : i32
    %c0_i32_0 = arith.constant 0 : i32
    %c0_i32_1 = arith.constant 0 : i32
    return %arg0, %c0_i32, %c0_i32_0 : i32, i32, i32
  }
  func.func @transform_3(%arg0: i32) -> (i32, i32, i32) {
    %c0_i32 = arith.constant 0 : i32
    %c0_i32_0 = arith.constant 0 : i32
    %c0_i32_1 = arith.constant 0 : i32
    return %arg0, %c0_i32, %c0_i32_0 : i32, i32, i32
  }
  func.func @transform_4(%arg0: i32) -> (i32, i32, i32) {
    %c0_i32 = arith.constant 0 : i32
    %c0_i32_0 = arith.constant 0 : i32
    %c0_i32_1 = arith.constant 0 : i32
    return %arg0, %c0_i32, %c0_i32_0 : i32, i32, i32
  }
  func.func @transform_5(%arg0: i32) -> (i32, i32) {
    %c0_i32 = arith.constant 0 : i32
    %c0_i32_0 = arith.constant 0 : i32
    %c0_i32_1 = arith.constant 0 : i32
    return %c0_i32, %c0_i32_0 : i32, i32
  }
}

</mosaic_0001>

<bundles_post_ra>
// kernel: triple_encoder_forward_pallas.1
= control target key start
LH: loop header
LB: loop body
LE: loop exit
PB: predicated region body
PF: predicated region fallthrough
CT: control target
= control target key end

     0   :  { %s3061_s18 = smov 0   ;;  %s3593_s0 = inlined_call_operand.vmem [shape: f32[72,32], index: 0, kind: input, shape index: {}]   ;;  %s3594_s1 = inlined_call_operand.vmem [shape: f32[2,32,768], index: 1, kind: input, shape index: {}]   ;;  %s3595_s2 = inlined_call_operand.vmem [shape: f32[2,32,384], index: 2, kind: input, shape index: {}]   ;;  %s3596_s3 = inlined_call_operand.vmem [shape: f32[2,1,768], index: 3, kind: input, shape index: {}]   ;;  %s3597_s4 = inlined_call_operand.vmem [shape: f32[2,1,128], index: 4, kind: input, shape index: {}]   ;;  %s3598_s5 = inlined_call_operand.vmem [shape: f32[8,128], index: 5, kind: output, shape index: {}]  }
   0x1 LB: > { %s3067_s19 = sadd.s32 4294967295, %s3026_s18   ;;  %p2552_p0 = scmp.ge.s32.totalorder %s3026_s18, 1  ;;  %s3026_s18 = sphi %s3061_s18, %s15_s18  }
   0x2   : > { %p209_p1 = scmp.lt.s32.totalorder %s3026_s18, 3 }
   0x4   : > { %p210_p2 = pnand %p2552_p0, %p209_p1 }
   0x5   : > { %p244_p3 = scmp.lt.s32.totalorder (!%p210_p2), %s3067_s19, 1  ;;  %p2555_p4 = scmp.ne.s32.totalorder (!%p210_p2), %s3067_s19, 0 }
   0x6   : > { %213 = sbr.rel (%p210_p2) target bundleno = 2448 (0x990), region = 40 }
   0xd   : > { %s3073_s20 = scalar_select %p244_p3, %s3067_s19, 1 }
   0xe   : > { %264 = sbr.rel (%p2555_p4) target bundleno = 21 (0x15), region = 44  ;;  %v265_v0 = vld [vmem:[%s3593_s0] sm:$0xff] (!%p2555_p4)  ;;  %vm274_vm0 = vcmask (!%p2555_p4), 261120   ;;  %v266_v1 = vld [vmem:[%s3593_s0 + $0x8] sm:$0xff] (!%p2555_p4)  ;;  %v267_v2 = vld [vmem:[%s3593_s0 + $0x10] sm:$0xff] (!%p2555_p4) }
   0xf   : > { %s2916_s21 = smul.u32 192, %s3073_s20  ;;  %s260_s24 = scalar_lea.vmem %s3597_s4, %s3073_s20  ;;  %275 = vst.msk [vmem:[#allocation2] sm:$0xff] (!%p2555_p4), %vm274_vm0, %v265_v0  ;;  %276 = vst.msk [vmem:[#allocation2 + $0x8] sm:$0xff] (!%p2555_p4), %vm274_vm0, %v266_v1  ;;  %v268_v3 = vld [vmem:[%s3593_s0 + $0x18] sm:$0xff] (!%p2555_p4)  ;;  %v269_v4 = vld [vmem:[%s3593_s0 + $0x20] sm:$0xff] (!%p2555_p4) }
  0x10   : > { %s2917_s25 = smul.u32 96, %s3073_s20  ;;  %277 = vst.msk [vmem:[#allocation2 + $0x10] sm:$0xff] (!%p2555_p4), %vm274_vm0, %v267_v2  ;;  %v270_v5 = vld [vmem:[%s3593_s0 + $0x28] sm:$0xff] (!%p2555_p4)  ;;  %278 = vst.msk [vmem:[#allocation2 + $0x18] sm:$0xff] (!%p2555_p4), %vm274_vm0, %v268_v3  ;;  %v271_v6 = vld [vmem:[%s3593_s0 + $0x30] sm:$0xff] (!%p2555_p4) }
  0x11   : > { %s3084_s28 = scalar_lea.vmem %s3594_s1, %s2916_s21  ;;  %s2918_s29 = smul.u32 6, %s3073_s20  ;;  %279 = vst.msk [vmem:[#allocation2 + $0x20] sm:$0xff] (!%p2555_p4), %vm274_vm0, %v269_v4  ;;  %280 = vst.msk [vmem:[#allocation2 + $0x28] sm:$0xff] (!%p2555_p4), %vm274_vm0, %v270_v5  ;;  %v272_v7 = vld [vmem:[%s3593_s0 + $0x38] sm:$0xff] (!%p2555_p4)  ;;  %v273_v8 = vld [vmem:[%s3593_s0 + $0x40] sm:$0xff] (!%p2555_p4) }
  0x12   : > { %s3090_s7 = scalar_lea.vmem %s3595_s2, %s2917_s25  ;;  %281 = vst.msk [vmem:[#allocation2 + $0x30] sm:$0xff] (!%p2555_p4), %vm274_vm0, %v271_v6  ;;  %282 = vst.msk [vmem:[#allocation2 + $0x38] sm:$0xff] (!%p2555_p4), %vm274_vm0, %v272_v7 }
  0x13   : > { %s3095_s10 = scalar_lea.vmem %s3596_s3, %s2918_s29  ;;  %283 = vst.msk [vmem:[#allocation2 + $0x40] sm:$0xff] (!%p2555_p4), %vm274_vm0, %v273_v8 }
  0x15 PF: > { %p2556_p5 = scmp.le.s32.totalorder %s3067_s19, 0 }
  0x16   : > { %v288_v9 = vlaneseq (!%p2556_p5)  ;;  %v291_v10 = vld [vmem:[#allocation4] sm:$0xff] (!%p2556_p5)  ;;  %vm295_vm1 = vcmask (!%p2556_p5), 261120   ;;  %v298_v12 = vld [vmem:[#allocation4 + $0x8] sm:$0xff] (!%p2556_p5)  ;;  %v300_v13 = vld [vmem:[#allocation4 + $0x38] sm:$0xff] (!%p2556_p5) }
  0x17   : > { %287 = sbr.rel (%p2556_p5) target bundleno = 32 (0x20), region = 48  ;;  %v293_v11 = vld [vmem:[#allocation4 + $0x40] sm:$0xff] (!%p2556_p5)  ;;  %v305_v14 = vld [vmem:[#allocation4 + $0x10] sm:$0xff] (!%p2556_p5)  ;;  %v312_v17 = vld [vmem:[#allocation4 + $0x18] sm:$0xff] (!%p2556_p5) }
  0x18   : > { %v307_v15 = vld [vmem:[#allocation4 + $0x30] sm:$0xff] (!%p2556_p5)  ;;  %v289_v16 = vand.u32 (!%p2556_p5), 127, %v288_v9  ;;  %v314_v18 = vld [vmem:[#allocation4 + $0x28] sm:$0xff] (!%p2556_p5)  ;;  %v319_v19 = vld [vmem:[#allocation4 + $0x20] sm:$0xff] (!%p2556_p5) }
  0x19   : > { %321 = vst.msk [vmem:[#allocation2 + $0x20] sm:$0xff] (!%p2556_p5), %vm295_vm1, %v319_v19 }
  0x1a   : > { %vm290_vm2 = vcmp.lt.s32.totalorder (!%p2556_p5), %v289_v16, 16 }
  0x1b   : > { %v294_v20 = vsel (!%p2556_p5), %vm290_vm2, %v291_v10, %v293_v11  ;;  %v301_v21 = vsel (!%p2556_p5), %vm290_vm2, %v298_v12, %v300_v13  ;;  %v308_v22 = vsel (!%p2556_p5), %vm290_vm2, %v305_v14, %v307_v15  ;;  %v315_v23 = vsel (!%p2556_p5), %vm290_vm2, %v312_v17, %v314_v18 }
  0x1c   : > { %296 = vst.msk [vmem:[#allocation2] sm:$0xff] (!%p2556_p5), %vm295_vm1, %v294_v20  ;;  %303 = vst.msk [vmem:[#allocation2 + $0x8] sm:$0xff] (!%p2556_p5), %vm295_vm1, %v301_v21  ;;  %v324_v24 = vsel (!%p2556_p5), %vm290_vm2, %v314_v18, %v312_v17  ;;  %v329_v25 = vsel (!%p2556_p5), %vm290_vm2, %v307_v15, %v305_v14  ;;  %v334_v26 = vsel (!%p2556_p5), %vm290_vm2, %v300_v13, %v298_v12 }
  0x1d   : > { %310 = vst.msk [vmem:[#allocation2 + $0x10] sm:$0xff] (!%p2556_p5), %vm295_vm1, %v308_v22  ;;  %317 = vst.msk [vmem:[#allocation2 + $0x18] sm:$0xff] (!%p2556_p5), %vm295_vm1, %v315_v23  ;;  %v339_v27 = vsel (!%p2556_p5), %vm290_vm2, %v293_v11, %v291_v10 }
  0x1e   : > { %326 = vst.msk [vmem:[#allocation2 + $0x28] sm:$0xff] %vm295_vm1, %v324_v24  ;;  %331 = vst.msk [vmem:[#allocation2 + $0x30] sm:$0xff] %vm295_vm1, %v329_v25 }
  0x1f   : > { %336 = vst.msk [vmem:[#allocation2 + $0x38] sm:$0xff] %vm295_vm1, %v334_v26  ;;  %341 = vst.msk [vmem:[#allocation2 + $0x40] sm:$0xff] %vm295_vm1, %v339_v27 }
  0x20 PF: > { %v352_v28 = vld [vmem:[%s3084_s28 + $0x8] sm:$0xff]  ;;  %v358_v29 = vld [vmem:[%s3084_s28 + $0x38] sm:$0xff]  ;;  %v351_v33 = vld [vmem:[%s3084_s28] sm:$0xff]  ;;  %v3028_v35 = vmov 0.0   ;;  %vm407_vm3 = vcmask 261120   ;;  %v3029_v16 = vmov 0.0|0.0  }
  0x21   : > { %v354_v30 = vld [vmem:[%s3084_s28 + $0x18] sm:$0xff]  ;;  %v2766_v31 = vpack.c.bf16 %v358_v29, %v352_v28  ;;  %v360_v32 = vld [vmem:[%s3084_s28 + $0x48] sm:$0xff]  ;;  %v357_v34 = vld [vmem:[%s3084_s28 + $0x30] sm:$0xff]  ;;  %499 = vmatprep.mubr.f32.mxu0 %v3028_v35  ;;  %618 = vmatprep.mubr.f32.mxu1 %v3028_v35  ;;  %vm3030_vm4 = vmmov 0   ;;  %v377_v29 = vlaneseq  ;;  %p2619_p6 = scmp.ne.s32.totalorder %s3067_s19, 1 }
  0x22   : > { %v2774_v36 = vpack.c.bf16 %v360_v32, %v354_v30  ;;  %v2768_v37 = vpack.c.bf16 %v357_v34, %v351_v33  ;;  %v353_v38 = vld [vmem:[%s3084_s28 + $0x10] sm:$0xff]  ;;  %v359_v39 = vld [vmem:[%s3084_s28 + $0x40] sm:$0xff]  ;;  %v364_v40 = vld [vmem:[%s3084_s28 + $0x68] sm:$0xff] }
  0x23   : > { %2767 = vmatprep.subr.bf16.mxu0 %v2766_v31  ;;  %v2776_v41 = vpack.c.bf16 %v359_v39, %v353_v38  ;;  %v370_v42 = vld [vmem:[%s3084_s28 + $0x98] sm:$0xff]  ;;  %v372_v44 = vld [vmem:[%s3084_s28 + $0xa8] sm:$0xff]  ;;  %v363_v47 = vld [vmem:[%s3084_s28 + $0x60] sm:$0xff]  ;;  %v3282_v30 = vshrl.u32 %v377_v29, 7 }
  0x24   : > { %v366_v43 = vld [vmem:[%s3084_s28 + $0x78] sm:$0xff]  ;;  %2775 = vmatprep.subr.bf16.mxu1 %v2774_v36  ;;  %2769 = vmatpush1.bf16.msra.mxu0 %v2768_v37  ;;  %v2770_v45 = vpack.c.bf16 %v370_v42, %v364_v40  ;;  %v369_v48 = vld [vmem:[%s3084_s28 + $0x90] sm:$0xff]  ;;  %v371_v51 = vld [vmem:[%s3084_s28 + $0xa0] sm:$0xff] }
  0x25   : > { %v2778_v46 = vpack.c.bf16 %v372_v44, %v366_v43  ;;  %v365_v49 = vld [vmem:[%s3084_s28 + $0x70] sm:$0xff]  ;;  %2777 = vmatpush1.bf16.msra.mxu1 %v2776_v41  ;;  %v2772_v50 = vpack.c.bf16 %v369_v48, %v363_v47  ;;  %v356_v52 = vld [vmem:[%s3084_s28 + $0x28] sm:$0xff]  ;;  %v362_v54 = vld [vmem:[%s3084_s28 + $0x58] sm:$0xff]  ;;  %v391_v31 = vsub.s32 3, %v3282_v30  ;;  %v379_v33 = vsub.s32 0, %v3282_v30 }
  0x26   : > { %2771 = vmatprep.subr.bf16.mxu0 %v2770_v45  ;;  %v2780_v53 = vpack.c.bf16 %v371_v51, %v365_v49  ;;  %v355_v55 = vld [vmem:[%s3084_s28 + $0x20] sm:$0xff]  ;;  %v361_v56 = vld [vmem:[%s3084_s28 + $0x50] sm:$0xff]  ;;  %v2782_v57 = vpack.c.bf16 %v362_v54, %v356_v52  ;;  %v368_v60 = vld [vmem:[%s3084_s28 + $0x88] sm:$0xff]  ;;  %v383_v37 = vsub.s32 1, %v3282_v30  ;;  %v387_v38 = vsub.s32 2, %v3282_v30 }
  0x27   : > { %2779 = vmatprep.subr.bf16.mxu1 %v2778_v46  ;;  %v3166_v58 = vld [vmem:[#allocation2] sm:$0xff]  ;;  %v2784_v59 = vpack.c.bf16 %v361_v56, %v355_v55  ;;  %v374_v61 = vld [vmem:[%s3084_s28 + $0xb8] sm:$0xff]  ;;  %v847_v63 = vld [vmem:[%s3090_s7 + $0x8] sm:$0xff] }
  0x28   : > { %2773 = vmatpush1.bf16.msra.mxu0 %v2772_v50  ;;  %v367_v62 = vld [vmem:[%s3084_s28 + $0x80] sm:$0xff]  ;;  %v2786_v0 = vpack.c.bf16 %v374_v61, %v368_v60  ;;  %v373_v1 = vld [vmem:[%s3084_s28 + $0xb0] sm:$0xff]  ;;  %v849_v5 = vld [vmem:[%s3090_s7 + $0x18] sm:$0xff] }
  0x29   : > { %2781 = vmatpush1.bf16.msra.mxu1 %v2780_v53  ;;  %2783 = vmatprep.subr.bf16.mxu0 %v2782_v57  ;;  %v850_v2 = vld [vmem:[%s3090_s7 + $0x20] sm:$0xff]  ;;  %v3182_v6 = vld [vmem:[#allocation2 + $0x8] sm:$0xff]  ;;  %v853_v8 = vld [vmem:[%s3090_s7 + $0x38] sm:$0xff]  ;;  %v2788_v10 = vpack.c.bf16 %v373_v1, %v367_v62 }
  0x2a   : > { %v846_v3 = vld [vmem:[%s3090_s7] sm:$0xff]  ;;  %v3177_v4 = vpack.c.bf16 %v850_v2, %v847_v63  ;;  %v856_v9 = vld [vmem:[%s3090_s7 + $0x50] sm:$0xff]  ;;  %v855_v12 = vld [vmem:[%s3090_s7 + $0x48] sm:$0xff] }
  0x2b   : > { %2557 = vmatmul.mubr.msk.f32.vlgmr.msra.gmra.mrb[0].mxu0 %vm407_vm3, %v3166_v58  ;;  %v3184_v7 = vpack.c.bf16 %v849_v5, %v846_v3  ;;  %v852_v11 = vld [vmem:[%s3090_s7 + $0x30] sm:$0xff]  ;;  %v3193_v13 = vpack.c.bf16 %v856_v9, %v853_v8  ;;  %v345_v17 = vld [vmem:[#allocation2 + $0x18] sm:$0xff]  ;;  %v346_v18 = vld [vmem:[#allocation2 + $0x20] sm:$0xff] }
  0x2c   : > { %2566 = vmatmul.mubr.msk.f32.vlgmr.msra.gmra.mrb[0].mxu1 %vm407_vm3, %v3166_v58  ;;  %2785 = vmatpush1.bf16.msra.mxu0 %v2784_v59  ;;  %v3198_v14 = vpack.c.bf16 %v855_v12, %v852_v11  ;;  %v344_v15 = vld [vmem:[#allocation2 + $0x10] sm:$0xff]  ;;  %v347_v19 = vld [vmem:[#allocation2 + $0x28] sm:$0xff]  ;;  %v349_v21 = vld [vmem:[#allocation2 + $0x38] sm:$0xff] }
  0x2d   : > { %505 = vmatprep.mubr.f32.mxu0 %v3028_v35  ;;  %624 = vmatprep.mubr.f32.mxu1 %v3028_v35  ;;  %v348_v20 = vld [vmem:[#allocation2 + $0x30] sm:$0xff]  ;;  %v350_v22 = vld [vmem:[#allocation2 + $0x40] sm:$0xff]  ;;  %v851_v24 = vld [vmem:[%s3090_s7 + $0x28] sm:$0xff] }
  0x2e   : > { %2787 = vmatprep.subr.bf16.mxu0 %v2786_v0  ;;  %2791 = vmatprep.subr.bf16.mxu1 %v3177_v4  ;;  %v848_v23 = vld [vmem:[%s3090_s7 + $0x10] sm:$0xff]  ;;  %v854_v26 = vld [vmem:[%s3090_s7 + $0x40] sm:$0xff]  ;;  %v857_v27 = vld [vmem:[%s3090_s7 + $0x58] sm:$0xff] }
  0x2f   : > { %2558 = vmatmul.mubr.msk.f32.gmra.mrb[2].mxu0 %vm407_vm3, %v3182_v6  ;;  %2793 = vmatpush1.bf16.msra.mxu1 %v3184_v7  ;;  %v3238_v25 = vpack.c.bf16 %v851_v24, %v848_v23  ;;  %v3247_v28 = vpack.c.bf16 %v857_v27, %v854_v26  ;;  %v3286_v32 = vld [vmem:[%s3095_s10] sm:$0x3f] }
  0x30   : > { %2567 = vmatmul.mubr.msk.f32.gmra.mrb[2].mxu1 %vm407_vm3, %v3182_v6  ;;  %511 = vmatprep.mubr.f32.mxu0 %v3028_v35  ;;  %v3290_v34 = vrot.slane %v3286_v32, %v391_v31  ;;  %v3301_v42 = vrot.slane %v3286_v32, %v379_v33  ;;  %v3307_v44 = vrot.slane %v3286_v32, %v383_v37 }
  0x31   : > { %630 = vmatprep.mubr.f32.mxu1 %v3028_v35  ;;  %2789 = vmatpush1.bf16.msra.mxu0 %v2788_v10  ;;  %v3310_v46 = vrot.slane %v3286_v32, %v387_v38 }
  0x32   : > { %2795 = vmatprep.subr.bf16.mxu1 %v3193_v13  ;;  %2826 = vmatprep.subr.bf16.mxu0 %v3029_v16 }
  0x33   : > { %2559 = vmatmul.mubr.msk.f32.gmra.mrb[4].mxu0 %vm407_vm3, %v344_v15  ;;  %2797 = vmatpush1.bf16.msra.mxu1 %v3198_v14 }
  0x34   : > { %2568 = vmatmul.mubr.msk.f32.gmra.mrb[4].mxu1 %vm407_vm3, %v344_v15  ;;  %517 = vmatprep.mubr.f32.mxu0 %v3028_v35 }
  0x35   : > { %636 = vmatprep.mubr.f32.mxu1 %v3028_v35  ;;  %2798 = vmatprep.subr.bf16.mxu1 %v3029_v16 }
  0x37   : > { %2560 = vmatmul.mubr.msk.f32.gmra.mrb[6].mxu0 %vm407_vm3, %v345_v17 }
  0x38   : > { %2569 = vmatmul.mubr.msk.f32.gmra.mrb[6].mxu1 %vm407_vm3, %v345_v17  ;;  %523 = vmatprep.mubr.f32.mxu0 %v3028_v35 }
  0x39   : > { %642 = vmatprep.mubr.f32.mxu1 %v3028_v35 }
  0x3b   : > { %2561 = vmatmul.mubr.msk.f32.gmra.mrb[8].mxu0 %vm407_vm3, %v346_v18 }
  0x3c   : > { %2570 = vmatmul.mubr.msk.f32.gmra.mrb[8].mxu1 %vm407_vm3, %v346_v18  ;;  %529 = vmatprep.mubr.f32.mxu0 %v3028_v35 }
  0x3d   : > { %648 = vmatprep.mubr.f32.mxu1 %v3028_v35 }
  0x3f   : > { %2562 = vmatmul.mubr.msk.f32.gmra.mrb[10].mxu0 %vm407_vm3, %v347_v19 }
  0x40   : > { %2571 = vmatmul.mubr.msk.f32.gmra.mrb[10].mxu1 %vm407_vm3, %v347_v19  ;;  %535 = vmatprep.mubr.f32.mxu0 %v3028_v35 }
  0x41   : > { %654 = vmatprep.mubr.f32.mxu1 %v3028_v35 }
  0x43   : > { %2563 = vmatmul.mubr.msk.f32.gmra.mrb[12].mxu0 %vm407_vm3, %v348_v20 }
  0x44   : > { %2572 = vmatmul.mubr.msk.f32.gmra.mrb[12].mxu1 %vm407_vm3, %v348_v20  ;;  %541 = vmatprep.mubr.f32.mxu0 %v3028_v35 }
  0x45   : > { %660 = vmatprep.mubr.f32.mxu1 %v3028_v35 }
  0x47   : > { %2564 = vmatmul.mubr.msk.f32.gmra.mrb[14].mxu0 %vm407_vm3, %v349_v21 }
  0x48   : > { %2573 = vmatmul.mubr.msk.f32.gmra.mrb[14].mxu1 %vm407_vm3, %v349_v21  ;;  %547 = vmatprep.mubr.f32.mxu0 %v3028_v35 }
  0x49   : > { %666 = vmatprep.mubr.f32.mxu1 %v3028_v35 }
  0x4b   : > { %2565 = vmatmul.mubr.msk.f32.gmra.mrb[16].mxu0 %vm407_vm3, %v350_v22 }
  0x4c   : > { %2574 = vmatmul.mubr.msk.f32.gmra.mrb[16].mxu1 %vm407_vm3, %v350_v22  ;;  %737 = vmatprep.mubr.f32.mxu0 %v3028_v35 }
  0x4d   : > { %947 = vmatprep.mubr.f32.mxu1 %v3028_v35 }
  0x4f   : > { %2575 = vmatmul.mubr.msk.f32.vlgmr.msra.gmra.mrb[18].mxu0 %vm407_vm3, %v3166_v58 }
  0x50   : > { %948 = vmatmul.mubr.f32.vlgmr.msra.gmra.mrb[18].mxu1 %v3028_v35  ;;  %743 = vmatprep.mubr.f32.mxu0 %v3028_v35 }
  0x51   : > { %2800 = vmatpush3.bf16.msra.mxu1 %v3238_v25  ;;  %2675 = vmatprep.mubr.msk.f32.mxu1 %vm3030_vm4, %v3028_v35 }
  0x52   : > { %2801 = vmatprep.subr.bf16.mxu1 %v3029_v16  ;;  %2828 = vmatpush3.bf16.msra.mxu0 %v3238_v25 }
  0x53   : > { %2576 = vmatmul.mubr.msk.f32.gmra.mrb[20].mxu0 %vm407_vm3, %v3182_v6  ;;  %2829 = vmatprep.subr.bf16.mxu0 %v3029_v16 }
  0x54   : > { %749 = vmatprep.mubr.f32.mxu0 %v3028_v35 }
  0x55   : > { %2803 = vmatpush3.bf16.msra.mxu1 %v3247_v28 }
  0x56   : > { %2805 = vmatprep.subr.bf16.mxu1 %v3177_v4  ;;  %2831 = vmatpush3.bf16.msra.mxu0 %v3247_v28 }
  0x57   : > { %2577 = vmatmul.mubr.msk.f32.gmra.mrb[22].mxu0 %vm407_vm3, %v344_v15  ;;  %2840 = vmatprep.subr.bf16.mxu0 %v3029_v16 }
  0x58   : > { %755 = vmatprep.mubr.f32.mxu0 %v3028_v35  ;;  %2676 = vmatmul.mubr.f32.vlgmr.msra.gmra.mrb[20].mxu1 %v3028_v35 }
  0x59   : > { %2807 = vmatpush1.bf16.msra.mxu1 %v3184_v7  ;;  %1128 = vmatprep.mubr.f32.mxu1 %v3028_v35 }
  0x5a   : > { %2809 = vmatprep.subr.bf16.mxu1 %v3193_v13 }
  0x5b   : > { %2578 = vmatmul.mubr.msk.f32.gmra.mrb[24].mxu0 %vm407_vm3, %v345_v17 }
  0x5c   : > { %761 = vmatprep.mubr.f32.mxu0 %v3028_v35 }
  0x5d   : > { %2811 = vmatpush1.bf16.msra.mxu1 %v3198_v14 }
  0x5e   : > { %2812 = vmatprep.subr.bf16.mxu1 %v3029_v16 }
  0x5f   : > { %2579 = vmatmul.mubr.msk.f32.gmra.mrb[26].mxu0 %vm407_vm3, %v346_v18 }
  0x60   : > { %767 = vmatprep.mubr.f32.mxu0 %v3028_v35 }
  0x63   : > { %2580 = vmatmul.mubr.msk.f32.gmra.mrb[28].mxu0 %vm407_vm3, %v347_v19 }
  0x64   : > { %773 = vmatprep.mubr.f32.mxu0 %v3028_v35 }
  0x67   : > { %2581 = vmatmul.mubr.msk.f32.gmra.mrb[30].mxu0 %vm407_vm3, %v348_v20 }
  0x68   : > { %779 = vmatprep.mubr.f32.mxu0 %v3028_v35 }
  0x6b   : > { %2582 = vmatmul.mubr.msk.f32.gmra.mrb[32].mxu0 %vm407_vm3, %v349_v21 }
  0x6c   : > { %785 = vmatprep.mubr.f32.mxu0 %v3028_v35 }
  0x6f   : > { %2583 = vmatmul.mubr.msk.f32.gmra.mrb[34].mxu0 %vm407_vm3, %v350_v22 }
  0x70   : > { %2697 = vmatprep.mubr.msk.f32.mxu0 %vm3030_vm4, %v3028_v35 }
  0xfe   : > { %v3292_v36 = vpop.f32.mrb[0].mxu0 }
  0xff   : > { %v3296_v39 = vpop.f32.mrb[1].mxu0  ;;  %v3298_v40 = vpop.f32.mrb[0].mxu1 }
 0x100   : > { %v622_v41 = vpop.f32.mrb[1].mxu1 }
 0x101   : > { %v3304_v43 = vadd.f32 %v622_v41, %v3290_v34 }
 0x102   : > { %v507_v45 = vpop.f32.mrb[2].mxu0 }
 0x103   : > { %v3313_v47 = vadd.f32 %v507_v45, %v3301_v42  ;;  %v509_v48 = vpop.f32.mrb[3].mxu0  ;;  %v626_v49 = vpop.f32.mrb[2].mxu1 }
 0x104   : > { %v3316_v50 = vadd.f32 %v509_v48, %v3307_v44  ;;  %v3319_v51 = vadd.f32 %v626_v49, %v3310_v46  ;;  %v628_v52 = vpop.f32.mrb[3].mxu1 }
 0x105   : > { %v629_v53 = vadd.f32 %v628_v52, %v3290_v34 }
 0x106   : > { %v513_v54 = vpop.f32.mrb[4].mxu0 }
 0x107   : > { %v514_v55 = vadd.f32 %v513_v54, %v3301_v42  ;;  %v515_v56 = vpop.f32.mrb[5].mxu0  ;;  %v632_v57 = vpop.f32.mrb[4].mxu1 }
 0x108   : > { %v3324_v58 = vadd.f32 %v515_v56, %v3307_v44  ;;  %v3327_v59 = vadd.f32 %v632_v57, %v3310_v46  ;;  %v634_v60 = vpop.f32.mrb[5].mxu1 }
 0x109   : > { %v635_v61 = vadd.f32 %v634_v60, %v3290_v34 }
 0x10a   : > { %v519_v62 = vpop.f32.mrb[6].mxu0 }
 0x10b   : > { %v520_v63 = vadd.f32 %v519_v62, %v3301_v42  ;;  %v521_v0 = vpop.f32.mrb[7].mxu0  ;;  %v638_v1 = vpop.f32.mrb[6].mxu1 }
 0x10c   : > { %v3332_v2 = vadd.f32 %v521_v0, %v3307_v44  ;;  %v3335_v3 = vadd.f32 %v638_v1, %v3310_v46  ;;  %v640_v5 = vpop.f32.mrb[7].mxu1  ;;  %v395_v1 = vsub.s32 4, %v3282_v30 }
 0x10d   : > { %v641_v6 = vadd.f32 %v640_v5, %v3290_v34 }
 0x10e   : > { %v525_v8 = vpop.f32.mrb[8].mxu0 }
 0x10f   : > { %v526_v9 = vadd.f32 %v525_v8, %v3301_v42  ;;  %v644_v10 = vpop.f32.mrb[8].mxu1  ;;  %v527_v11 = vpop.f32.mrb[9].mxu0 }
 0x110   : > { %v3340_v12 = vadd.f32 %v644_v10, %v3310_v46  ;;  %v3343_v15 = vadd.f32 %v527_v11, %v3307_v44  ;;  %v646_v17 = vpop.f32.mrb[9].mxu1 }
 0x111   : > { %v647_v18 = vadd.f32 %v646_v17, %v3290_v34 }
 0x112   : > { %v531_v19 = vpop.f32.mrb[10].mxu0 }
 0x113   : > { %v532_v20 = vadd.f32 %v531_v19, %v3301_v42  ;;  %v650_v21 = vpop.f32.mrb[10].mxu1  ;;  %v533_v22 = vpop.f32.mrb[11].mxu0  ;;  %v3347_v23 = vadd.f32 %v647_v18, %v526_v9  ;;  %v399_v9 = vsub.s32 5, %v3282_v30 }
 0x114   : > { %v3350_v24 = vadd.f32 %v650_v21, %v3310_v46  ;;  %v3353_v26 = vadd.f32 %v533_v22, %v3307_v44  ;;  %v652_v27 = vpop.f32.mrb[11].mxu1 }
 0x115   : > { %v653_v29 = vadd.f32 %v652_v27, %v3290_v34  ;;  %v3356_v31 = vadd.f32 %v641_v6, %v532_v20  ;;  %v3378_v20 = vrot.slane %v3286_v32, %v395_v1  ;;  %v3386_v27 = vrot.slane %v3286_v32, %v399_v9 }
 0x116   : > { %v537_v33 = vpop.f32.mrb[12].mxu0 }
 0x117   : > { %v538_v37 = vadd.f32 %v537_v33, %v3301_v42  ;;  %v656_v38 = vpop.f32.mrb[12].mxu1  ;;  %v539_v41 = vpop.f32.mrb[13].mxu0  ;;  %v3359_v45 = vadd.f32 %v653_v29, %v520_v63 }
 0x118   : > { %v657_v48 = vadd.f32 %v656_v38, %v3310_v46  ;;  %v540_v49 = vadd.f32 %v539_v41, %v3307_v44  ;;  %v658_v52 = vpop.f32.mrb[13].mxu1 }
 0x119   : > { %v659_v54 = vadd.f32 %v658_v52, %v3290_v34  ;;  %v3364_v56 = vadd.f32 %v635_v61, %v538_v37 }
 0x11a   : > { %v543_v57 = vpop.f32.mrb[14].mxu0 }
 0x11b   : > { %v544_v60 = vadd.f32 %v543_v57, %v3301_v42  ;;  %v662_v62 = vpop.f32.mrb[14].mxu1  ;;  %v545_v0 = vpop.f32.mrb[15].mxu0  ;;  %v3368_v5 = vadd.f32 %v659_v54, %v514_v55 }
 0x11c   : > { %v663_v63 = vadd.f32 %v662_v62, %v3310_v46  ;;  %v546_v6 = vadd.f32 %v545_v0, %v3307_v44  ;;  %v664_v8 = vpop.f32.mrb[15].mxu1 }
 0x11d   : > { %v665_v10 = vadd.f32 %v664_v8, %v3290_v34  ;;  %v3374_v61 = vadd.f32 %v629_v53, %v544_v60  ;;  %v502_v53 = vadd.f32 %v3292_v36, %v3301_v42 }
 0x11e   : > { %v549_v11 = vpop.f32.mrb[16].mxu0 }
 0x11f   : > { %v550_v17 = vadd.f32 %v549_v11, %v3301_v42  ;;  %v668_v18 = vpop.f32.mrb[16].mxu1  ;;  %v551_v19 = vpop.f32.mrb[17].mxu0  ;;  %v3381_v55 = vadd.f32 %v665_v10, %v3313_v47 }
 0x120   : > { %v669_v21 = vadd.f32 %v668_v18, %v3310_v46  ;;  %v552_v22 = vadd.f32 %v551_v19, %v3307_v44  ;;  %v670_v30 = vpop.f32.mrb[17].mxu1 }
 0x121   : > { %v671_v29 = vadd.f32 %v670_v30, %v3290_v34  ;;  %v3392_v33 = vadd.f32 %v3304_v43, %v550_v17 }
 0x122   : > { %v739_v37 = vpop.f32.mrb[18].mxu0 }
 0x123   : > { %v740_v47 = vadd.f32 %v739_v37, %v3378_v20  ;;  %v741_v38 = vpop.f32.mrb[19].mxu0  ;;  %v877_v41 = vadd.f32 %v671_v29, %v502_v53  ;;  %v949_v52 = vpop.f32.mrb[18].mxu1 }
 0x124   : > { %v742_v54 = vadd.f32 %v741_v38, %v3386_v27  ;;  %v3396_v57 = vpop.f32.mrb[19].mxu1 }
 0x125   : > { %v1024_v32 = vadd.f32 %v949_v52, %v877_v41  ;;  %v3398_v60 = vadd.f32 %v740_v47, %v552_v22 }
 0x126   : > { %v3400_v62 = vadd.f32 %v742_v54, %v669_v21  ;;  %v745_v36 = vpop.f32.mrb[20].mxu0 }
 0x127   : > { %v2585_v34 = vmul.f32 -1.442695, %v1024_v32  ;;  %v746_v42 = vadd.f32 %v745_v36, %v3378_v20  ;;  %v747_v43 = vpop.f32.mrb[21].mxu0 }
 0x128   : > { %v748_v0 = vadd.f32 %v747_v43, %v3386_v27 }
 0x129   : > { %2930 = vpow2.f32 %v2585_v34  ;;  %v3404_v1 = vadd.f32 %v746_v42, %v546_v6 }
 0x12a   : > { %v3406_v8 = vadd.f32 %v748_v0, %v663_v63  ;;  %v751_v9 = vpop.f32.mrb[22].mxu0 }
 0x12b   : > { %v752_v10 = vadd.f32 %v751_v9, %v3378_v20  ;;  %v753_v11 = vpop.f32.mrb[23].mxu0  ;;  %v1020_v17 = vpop.f32.mrb[20].mxu1 }
 0x12c   : > { %v754_v18 = vadd.f32 %v753_v11, %v3386_v27  ;;  %v2677_v19 = vpop.f32.mrb[21].mxu1 }
 0x12d   : > { %v3410_v21 = vadd.f32 %v752_v10, %v540_v49 }
 0x12e   : > { %v3412_v22 = vadd.f32 %v754_v18, %v657_v48  ;;  %v757_v30 = vpop.f32.mrb[24].mxu0 }
 0x12f   : > { %v758_v53 = vadd.f32 %v757_v30, %v3378_v20  ;;  %v759_v29 = vpop.f32.mrb[25].mxu0 }
 0x130   : > { %v760_v6 = vadd.f32 %v759_v29, %v3386_v27 }
 0x131   : > { %v3417_v63 = vadd.f32 %v758_v53, %v3353_v26 }
 0x132   : > { %v3420_v37 = vadd.f32 %v760_v6, %v3350_v24  ;;  %v763_v47 = vpop.f32.mrb[26].mxu0 }
 0x133   : > { %v2931_v38 = vpop.eup %2930  ;;  %v764_v49 = vadd.f32 %v763_v47, %v3378_v20  ;;  %v765_v41 = vpop.f32.mrb[27].mxu0 }
 0x134   : > { %v1028_v48 = vadd.f32 1.0, %v2931_v38  ;;  %v766_v52 = vadd.f32 %v765_v41, %v3386_v27  ;;  %v621_v41 = vadd.f32 %v3298_v40, %v3310_v46 }
 0x135   : > { %v3425_v54 = vadd.f32 %v764_v49, %v3343_v15  ;;  %v3443_v15 = vld [vmem:[%s260_s24] ss:$0 sm:$0xff] }
 0x136   : > { %2932 = vrcp.f32 %v1028_v48  ;;  %v3428_v32 = vadd.f32 %v766_v52, %v3340_v12  ;;  %v769_v26 = vpop.f32.mrb[28].mxu0  ;;  %v1038_v11 = vadd.f32 %v3443_v15, %v1020_v17 }
 0x137   : > { %v770_v24 = vadd.f32 %v769_v26, %v3378_v20  ;;  %v771_v36 = vpop.f32.mrb[29].mxu0 }
 0x138   : > { %v772_v34 = vadd.f32 %v771_v36, %v3386_v27 }
 0x139   : > { %v3433_v42 = vadd.f32 %v770_v24, %v3332_v2 }
 0x13a   : > { %v3436_v43 = vadd.f32 %v772_v34, %v3335_v3  ;;  %v775_v0 = vpop.f32.mrb[30].mxu0 }
 0x13b   : > { %v776_v12 = vadd.f32 %v775_v0, %v3378_v20  ;;  %v777_v9 = vpop.f32.mrb[31].mxu0 }
 0x13c   : > { %v778_v10 = vadd.f32 %v777_v9, %v3386_v27 }
 0x13d   : > { %v3449_v2 = vadd.f32 %v776_v12, %v3324_v58  ;;  %v504_v58 = vadd.f32 %v3296_v39, %v3307_v44 }
 0x13e   : > { %v3452_v3 = vadd.f32 %v778_v10, %v3327_v59  ;;  %v781_v18 = vpop.f32.mrb[32].mxu0 }
 0x13f   : > { %v782_v19 = vadd.f32 %v781_v18, %v3378_v20  ;;  %v783_v30 = vpop.f32.mrb[33].mxu0 }
 0x140   : > { %v2933_v53 = vpop.eup %2932  ;;  %v784_v29 = vadd.f32 %v783_v30, %v3386_v27 }
 0x141   : > { %v1039_v6 = vmul.f32 %v2933_v53, %v1038_v11  ;;  %v1059_v47 = vadd.f32 %v782_v19, %v3316_v50 }
 0x142   : > { %v1060_v38 = vadd.f32 %v784_v29, %v3319_v51  ;;  %v787_v49 = vpop.f32.mrb[34].mxu0 }
 0x143   : > { %v788_v17 = vadd.f32 %v787_v49, %v3378_v20  ;;  %v789_v59 = vpop.f32.mrb[35].mxu0 }
 0x144   : > { %v790_v48 = vadd.f32 %v789_v59, %v3386_v27 }
 0x145   : > { %v878_v52 = vadd.f32 %v788_v17, %v504_v58 }
 0x146   : > { %v879_v26 = vadd.f32 %v790_v48, %v621_v41 }
 0x147   : > { %v1031_v24 = vadd.f32 %v3396_v57, %v878_v52 }
 0x148   : > { %v1040_v36 = vadd.f32 %v1039_v6, %v879_v26 }
 0x149   : > { %v2586_v50 = vmul.f32 -1.442695, %v1031_v24 }
 0x14b   : > { %2934 = vpow2.f32 %v2586_v50 }
 0x14c   : > { %2936 = vtanh.f32 %v1040_v36 }
 0x155   : > { %v2935_v51 = vpop.eup %2934 }
 0x156   : > { %v1035_v34 = vadd.f32 1.0, %v2935_v51  ;;  %v2937_v39 = vpop.eup %2936 }
 0x157   : > { %v1042_v44 = vsub.f32 0.0, %v2937_v39 }
 0x158   : > { %2938 = vrcp.f32 %v1035_v34 }
 0x162   : > { %v2939_v20 = vpop.eup %2938 }
 0x163   : > { %v1043_v0 = vmul.f32 %v2939_v20, %v1042_v44 }
 0x165   : > { %v1044_v12 = vadd.f32 %v2937_v39, %v1043_v0 }
 0x167   : > { %1045 = vst [vmem:[#allocation4] sm:$0xff] %v1044_v12  ;;  %2587 = vmatmul.mubr.msk.f32.vlgmr.msra.gmra.mrb[22].mxu1 %vm407_vm3, %v1044_v12 }
 0x168   : > { %2814 = vmatpush3.bf16.msra.mxu1 %v3238_v25  ;;  %2686 = vmatprep.mubr.msk.f32.mxu1 %vm3030_vm4, %v3028_v35 }
 0x169   : > { %2815 = vmatprep.subr.bf16.mxu1 %v3029_v16 }
 0x16c   : > { %2817 = vmatpush3.bf16.msra.mxu1 %v3247_v28 }
 0x16d   : > { %2819 = vmatprep.subr.bf16.mxu1 %v3177_v4 }
 0x16f   : > { %2687 = vmatmul.mubr.msk.f32.vlgmr.msra.gmra.mrb[24].mxu1 %vm407_vm3, %v1044_v12 }
 0x170   : > { %2821 = vmatpush1.bf16.msra.mxu1 %v3184_v7  ;;  %1310 = vmatprep.mubr.f32.mxu1 %v3028_v35 }
 0x171   : > { %2823 = vmatprep.subr.bf16.mxu1 %v3193_v13 }
 0x174   : > { %2825 = vmatpush1.bf16.msra.mxu1 %v3198_v14 }
 0x175   : > { %2833 = vmatprep.subr.bf16.mxu1 %v3177_v4 }
 0x23a   : > { %v1130_v40 = vpop.f32.mrb[22].mxu1 }
 0x23b   : > { %v1205_v46 = vadd.f32 %v1130_v40, %v3381_v55  ;;  %v1132_v27 = vpop.f32.mrb[23].mxu1 }
 0x23c   : > { %v1212_v57 = vadd.f32 %v1132_v27, %v1059_v47 }
 0x23d   : > { %v2589_v9 = vmul.f32 -1.442695, %v1205_v46 }
 0x23e   : > { %v2590_v18 = vmul.f32 -1.442695, %v1212_v57 }
 0x23f   : > { %2940 = vpow2.f32 %v2589_v9 }
 0x240   : > { %2942 = vpow2.f32 %v2590_v18 }
 0x242   : > { %v1201_v10 = vpop.f32.mrb[24].mxu1 }
 0x243   : > { %v2688_v11 = vpop.f32.mrb[25].mxu1  ;;  %v1219_v29 = vadd.f32 %v3443_v15, %v1201_v10 }
 0x249   : > { %v2941_v19 = vpop.eup %2940 }
 0x24a   : > { %v1209_v30 = vadd.f32 1.0, %v2941_v19  ;;  %v2943_v53 = vpop.eup %2942 }
 0x24b   : > { %v1216_v58 = vadd.f32 1.0, %v2943_v53 }
 0x24c   : > { %2944 = vrcp.f32 %v1209_v30 }
 0x256   : > { %v2945_v6 = vpop.eup %2944 }
 0x257   : > { %v1220_v49 = vmul.f32 %v2945_v6, %v1219_v29 }
 0x259   : > { %v1221_v17 = vadd.f32 %v1220_v49, %v1060_v38 }
 0x25b   : > { %2946 = vtanh.f32 %v1221_v17 }
 0x25c   : > { %2948 = vrcp.f32 %v1216_v58 }
 0x265   : > { %v2947_v55 = vpop.eup %2946 }
 0x266   : > { %v1223_v47 = vsub.f32 %v1044_v12, %v2947_v55  ;;  %v2949_v59 = vpop.eup %2948 }
 0x268   : > { %v1224_v41 = vmul.f32 %v2949_v59, %v1223_v47 }
 0x26a   : > { %v1225_v48 = vadd.f32 %v2947_v55, %v1224_v41 }
 0x26c   : > { %1227 = vst [vmem:[#allocation4 + $0x8] sm:$0xff] %v1225_v48  ;;  %2591 = vmatmul.mubr.msk.f32.vlgmr.msra.gmra.mrb[26].mxu1 %vm407_vm3, %v1225_v48  ;;  %2698 = vmatmul.mubr.msk.f32.vlgmr.msra.gmra.mrb[36].mxu0 %vm407_vm3, %v1225_v48 }
 0x26d   : > { %2835 = vmatpush1.bf16.msra.mxu1 %v3184_v7  ;;  %2842 = vmatpush3.bf16.msra.mxu0 %v3238_v25 }
 0x26e   : > { %2837 = vmatprep.subr.bf16.mxu1 %v3193_v13  ;;  %2843 = vmatprep.subr.bf16.mxu0 %v3029_v16 }
 0x26f   : > { %1492 = vmatprep.mubr.f32.mxu1 %v3028_v35  ;;  %2708 = vmatprep.mubr.msk.f32.mxu0 %vm3030_vm4, %v3028_v35 }
 0x271   : > { %2839 = vmatpush1.bf16.msra.mxu1 %v3198_v14  ;;  %2845 = vmatpush3.bf16.msra.mxu0 %v3247_v28 }
 0x272   : > { %2847 = vmatprep.subr.bf16.mxu1 %v3177_v4  ;;  %2854 = vmatprep.subr.bf16.mxu0 %v3029_v16 }
 0x33f   : > { %v1312_v38 = vpop.f32.mrb[26].mxu1  ;;  %v1383_v52 = vpop.f32.mrb[36].mxu0 }
 0x340   : > { %v1387_v26 = vadd.f32 %v1312_v38, %v3368_v5  ;;  %v1314_v24 = vpop.f32.mrb[27].mxu1  ;;  %v2699_v36 = vpop.f32.mrb[37].mxu0  ;;  %v1401_v0 = vadd.f32 %v3443_v15, %v1383_v52 }
 0x341   : > { %v1394_v50 = vadd.f32 %v1314_v24, %v3449_v2 }
 0x342   : > { %v2593_v51 = vmul.f32 -1.442695, %v1387_v26 }
 0x343   : > { %v2594_v34 = vmul.f32 -1.442695, %v1394_v50 }
 0x344   : > { %2950 = vpow2.f32 %v2593_v51 }
 0x345   : > { %2952 = vpow2.f32 %v2594_v34 }
 0x34e   : > { %v2951_v39 = vpop.eup %2950 }
 0x34f   : > { %v1391_v44 = vadd.f32 1.0, %v2951_v39  ;;  %v2953_v20 = vpop.eup %2952 }
 0x350   : > { %v1398_v27 = vadd.f32 1.0, %v2953_v20 }
 0x351   : > { %2954 = vrcp.f32 %v1391_v44 }
 0x35b   : > { %v2955_v12 = vpop.eup %2954 }
 0x35c   : > { %v1402_v40 = vmul.f32 %v2955_v12, %v1401_v0 }
 0x35e   : > { %v1403_v46 = vadd.f32 %v1402_v40, %v3452_v3 }
 0x360   : > { %2956 = vtanh.f32 %v1403_v46 }
 0x361   : > { %2958 = vrcp.f32 %v1398_v27 }
 0x36a   : > { %v2957_v5 = vpop.eup %2956 }
 0x36b   : > { %v1405_v57 = vsub.f32 %v1225_v48, %v2957_v5  ;;  %v2959_v2 = vpop.eup %2958 }
 0x36d   : > { %v1406_v9 = vmul.f32 %v2959_v2, %v1405_v57 }
 0x36f   : > { %v1407_v10 = vadd.f32 %v2957_v5, %v1406_v9 }
 0x371   : > { %1409 = vst [vmem:[#allocation4 + $0x10] sm:$0xff] %v1407_v10  ;;  %2595 = vmatmul.mubr.msk.f32.vlgmr.msra.gmra.mrb[28].mxu1 %vm407_vm3, %v1407_v10  ;;  %2709 = vmatmul.mubr.msk.f32.vlgmr.msra.gmra.mrb[38].mxu0 %vm407_vm3, %v1407_v10 }
 0x372   : > { %2849 = vmatpush1.bf16.msra.mxu1 %v3184_v7  ;;  %2856 = vmatpush3.bf16.msra.mxu0 %v3238_v25 }
 0x373   : > { %2851 = vmatprep.subr.bf16.mxu1 %v3193_v13  ;;  %2857 = vmatprep.subr.bf16.mxu0 %v3029_v16 }
 0x374   : > { %1671 = vmatprep.mubr.f32.mxu1 %v3028_v35  ;;  %2719 = vmatprep.mubr.msk.f32.mxu0 %vm3030_vm4, %v3028_v35 }
 0x376   : > { %2853 = vmatpush1.bf16.msra.mxu1 %v3198_v14  ;;  %2859 = vmatpush3.bf16.msra.mxu0 %v3247_v28 }
 0x377   : > { %2861 = vmatprep.subr.bf16.mxu1 %v3177_v4  ;;  %2868 = vmatprep.subr.bf16.mxu0 %v3029_v16 }
 0x444   : > { %v1494_v3 = vpop.f32.mrb[28].mxu1  ;;  %v1565_v11 = vpop.f32.mrb[38].mxu0 }
 0x445   : > { %v1569_v18 = vadd.f32 %v1494_v3, %v3359_v45  ;;  %v1496_v19 = vpop.f32.mrb[29].mxu1  ;;  %v2710_v30 = vpop.f32.mrb[39].mxu0  ;;  %v1583_v55 = vadd.f32 %v3443_v15, %v1565_v11 }
 0x446   : > { %v1576_v53 = vadd.f32 %v1496_v19, %v3433_v42 }
 0x447   : > { %v2597_v29 = vmul.f32 -1.442695, %v1569_v18 }
 0x448   : > { %v2598_v6 = vmul.f32 -1.442695, %v1576_v53 }
 0x449   : > { %2960 = vpow2.f32 %v2597_v29 }
 0x44a   : > { %2962 = vpow2.f32 %v2598_v6 }
 0x453   : > { %v2961_v49 = vpop.eup %2960 }
 0x454   : > { %v1573_v58 = vadd.f32 1.0, %v2961_v49  ;;  %v2963_v17 = vpop.eup %2962 }
 0x455   : > { %v1580_v48 = vadd.f32 1.0, %v2963_v17 }
 0x456   : > { %2964 = vrcp.f32 %v1573_v58 }
 0x460   : > { %v2965_v47 = vpop.eup %2964 }
 0x461   : > { %v1584_v59 = vmul.f32 %v2965_v47, %v1583_v55 }
 0x463   : > { %v1585_v41 = vadd.f32 %v1584_v59, %v3436_v43 }
 0x465   : > { %2966 = vtanh.f32 %v1585_v41 }
 0x466   : > { %2968 = vrcp.f32 %v1580_v48 }
 0x46f   : > { %v2967_v45 = vpop.eup %2966 }
 0x470   : > { %v1587_v38 = vsub.f32 %v1407_v10, %v2967_v45  ;;  %v2969_v42 = vpop.eup %2968 }
 0x472   : > { %v1588_v52 = vmul.f32 %v2969_v42, %v1587_v38 }
 0x474   : > { %v1589_v26 = vadd.f32 %v2967_v45, %v1588_v52 }
 0x476   : > { %1591 = vst [vmem:[#allocation4 + $0x18] sm:$0xff] %v1589_v26  ;;  %2599 = vmatmul.mubr.msk.f32.vlgmr.msra.gmra.mrb[30].mxu1 %vm407_vm3, %v1589_v26  ;;  %2720 = vmatmul.mubr.msk.f32.vlgmr.msra.gmra.mrb[40].mxu0 %vm407_vm3, %v1589_v26 }
 0x477   : > { %2863 = vmatpush1.bf16.msra.mxu1 %v3184_v7  ;;  %2870 = vmatpush3.bf16.msra.mxu0 %v3238_v25 }
 0x478   : > { %2865 = vmatprep.subr.bf16.mxu1 %v3193_v13  ;;  %2871 = vmatprep.subr.bf16.mxu0 %v3029_v16 }
 0x479   : > { %1847 = vmatprep.mubr.f32.mxu1 %v3028_v35  ;;  %2730 = vmatprep.mubr.msk.f32.mxu0 %vm3030_vm4, %v3028_v35 }
 0x47b   : > { %2867 = vmatpush1.bf16.msra.mxu1 %v3198_v14  ;;  %2873 = vmatpush3.bf16.msra.mxu0 %v3247_v28 }
 0x47c   : > { %2875 = vmatprep.subr.bf16.mxu1 %v3177_v4  ;;  %2882 = vmatprep.subr.bf16.mxu0 %v3029_v16 }
 0x549   : > { %v1673_v43 = vpop.f32.mrb[30].mxu1  ;;  %v1744_v24 = vpop.f32.mrb[40].mxu0 }
 0x54a   : > { %v1748_v36 = vadd.f32 %v1673_v43, %v3347_v23  ;;  %v1675_v50 = vpop.f32.mrb[31].mxu1  ;;  %v2721_v51 = vpop.f32.mrb[41].mxu0  ;;  %v1762_v40 = vadd.f32 %v3443_v15, %v1744_v24 }
 0x54b   : > { %v1755_v34 = vadd.f32 %v1675_v50, %v3425_v54 }
 0x54c   : > { %v2601_v39 = vmul.f32 -1.442695, %v1748_v36 }
 0x54d   : > { %v2602_v44 = vmul.f32 -1.442695, %v1755_v34 }
 0x54e   : > { %2970 = vpow2.f32 %v2601_v39 }
 0x54f   : > { %2972 = vpow2.f32 %v2602_v44 }
 0x558   : > { %v2971_v20 = vpop.eup %2970 }
 0x559   : > { %v1752_v0 = vadd.f32 1.0, %v2971_v20  ;;  %v2973_v12 = vpop.eup %2972 }
 0x55a   : > { %v1759_v57 = vadd.f32 1.0, %v2973_v12 }
 0x55b   : > { %2974 = vrcp.f32 %v1752_v0 }
 0x565   : > { %v2975_v46 = vpop.eup %2974 }
 0x566   : > { %v1763_v27 = vmul.f32 %v2975_v46, %v1762_v40 }
 0x568   : > { %v1764_v5 = vadd.f32 %v1763_v27, %v3428_v32 }
 0x56a   : > { %2976 = vtanh.f32 %v1764_v5 }
 0x56b   : > { %2978 = vrcp.f32 %v1759_v57 }
 0x574   : > { %v2977_v23 = vpop.eup %2976 }
 0x575   : > { %v1766_v2 = vsub.f32 %v1589_v26, %v2977_v23  ;;  %v2979_v54 = vpop.eup %2978 }
 0x577   : > { %v1767_v9 = vmul.f32 %v2979_v54, %v1766_v2 }
 0x579   : > { %v1768_v10 = vadd.f32 %v2977_v23, %v1767_v9 }
 0x57b   : > { %1770 = vst [vmem:[#allocation4 + $0x20] sm:$0xff] %v1768_v10  ;;  %2603 = vmatmul.mubr.msk.f32.vlgmr.msra.gmra.mrb[32].mxu1 %vm407_vm3, %v1768_v10  ;;  %2731 = vmatmul.mubr.msk.f32.vlgmr.msra.gmra.mrb[42].mxu0 %vm407_vm3, %v1768_v10 }
 0x57c   : > { %2877 = vmatpush1.bf16.msra.mxu1 %v3184_v7  ;;  %2884 = vmatpush3.bf16.msra.mxu0 %v3238_v25 }
 0x57d   : > { %2879 = vmatprep.subr.bf16.mxu1 %v3193_v13  ;;  %2885 = vmatprep.subr.bf16.mxu0 %v3029_v16 }
 0x57e   : > { %2023 = vmatprep.mubr.f32.mxu1 %v3028_v35  ;;  %2741 = vmatprep.mubr.msk.f32.mxu0 %vm3030_vm4, %v3028_v35 }
 0x580   : > { %2881 = vmatpush1.bf16.msra.mxu1 %v3198_v14  ;;  %2887 = vmatpush3.bf16.msra.mxu0 %v3247_v28 }
 0x581   : > { %2889 = vmatprep.subr.bf16.mxu1 %v3177_v4  ;;  %2896 = vmatprep.subr.bf16.mxu0 %v3029_v16 }
 0x64e   : > { %v1849_v32 = vpop.f32.mrb[32].mxu1  ;;  %v1920_v3 = vpop.f32.mrb[42].mxu0 }
 0x64f   : > { %v1924_v11 = vadd.f32 %v1849_v32, %v3356_v31  ;;  %v1851_v18 = vpop.f32.mrb[33].mxu1  ;;  %v2732_v19 = vpop.f32.mrb[43].mxu0  ;;  %v1938_v17 = vadd.f32 %v3443_v15, %v1920_v3 }
 0x650   : > { %v1931_v30 = vadd.f32 %v1851_v18, %v3417_v63 }
 0x651   : > { %v2605_v53 = vmul.f32 -1.442695, %v1924_v11 }
 0x652   : > { %v2606_v29 = vmul.f32 -1.442695, %v1931_v30 }
 0x653   : > { %2980 = vpow2.f32 %v2605_v53 }
 0x654   : > { %2982 = vpow2.f32 %v2606_v29 }
 0x65d   : > { %v2981_v6 = vpop.eup %2980 }
 0x65e   : > { %v1928_v49 = vadd.f32 1.0, %v2981_v6  ;;  %v2983_v58 = vpop.eup %2982 }
 0x65f   : > { %v1935_v41 = vadd.f32 1.0, %v2983_v58 }
 0x660   : > { %2984 = vrcp.f32 %v1928_v49 }
 0x66a   : > { %v2985_v55 = vpop.eup %2984 }
 0x66b   : > { %v1939_v47 = vmul.f32 %v2985_v55, %v1938_v17 }
 0x66d   : > { %v1940_v59 = vadd.f32 %v1939_v47, %v3420_v37 }
 0x66f   : > { %2986 = vtanh.f32 %v1940_v59 }
 0x670   : > { %2988 = vrcp.f32 %v1935_v41 }
 0x679   : > { %v2987_v31 = vpop.eup %2986 }
 0x67a   : > { %v1942_v48 = vsub.f32 %v1768_v10, %v2987_v31  ;;  %v2989_v63 = vpop.eup %2988 }
 0x67c   : > { %v1943_v45 = vmul.f32 %v2989_v63, %v1942_v48 }
 0x67e   : > { %v1944_v38 = vadd.f32 %v2987_v31, %v1943_v45 }
 0x680   : > { %1946 = vst [vmem:[#allocation4 + $0x28] sm:$0xff] %v1944_v38  ;;  %2607 = vmatmul.mubr.msk.f32.vlgmr.msra.gmra.mrb[34].mxu1 %vm407_vm3, %v1944_v38  ;;  %2742 = vmatmul.mubr.msk.f32.vlgmr.msra.gmra.mrb[44].mxu0 %vm407_vm3, %v1944_v38 }
 0x681   : > { %2891 = vmatpush1.bf16.msra.mxu1 %v3184_v7  ;;  %2898 = vmatpush3.bf16.msra.mxu0 %v3238_v25 }
 0x682   : > { %2893 = vmatprep.subr.bf16.mxu1 %v3193_v13  ;;  %2899 = vmatprep.subr.bf16.mxu0 %v3029_v16 }
 0x683   : > { %2199 = vmatprep.mubr.f32.mxu1 %v3028_v35  ;;  %2752 = vmatprep.mubr.msk.f32.mxu0 %vm3030_vm4, %v3028_v35 }
 0x685   : > { %2895 = vmatpush1.bf16.msra.mxu1 %v3198_v14  ;;  %2901 = vmatpush3.bf16.msra.mxu0 %v3247_v28 }
 0x686   : > { %2903 = vmatprep.subr.bf16.mxu1 %v3177_v4  ;;  %2910 = vmatprep.subr.bf16.mxu0 %v3029_v16 }
 0x753   : > { %v2025_v37 = vpop.f32.mrb[34].mxu1  ;;  %v2096_v42 = vpop.f32.mrb[44].mxu0 }
 0x754   : > { %v2100_v52 = vadd.f32 %v2025_v37, %v3364_v56  ;;  %v2027_v26 = vpop.f32.mrb[35].mxu1  ;;  %v2743_v43 = vpop.f32.mrb[45].mxu0  ;;  %v2114_v4 = vadd.f32 %v3443_v15, %v2096_v42 }
 0x755   : > { %v2107_v24 = vadd.f32 %v2027_v26, %v3410_v21 }
 0x756   : > { %v2609_v36 = vmul.f32 -1.442695, %v2100_v52 }
 0x757   : > { %v2610_v50 = vmul.f32 -1.442695, %v2107_v24 }
 0x758   : > { %2990 = vpow2.f32 %v2609_v36 }
 0x759   : > { %2992 = vpow2.f32 %v2610_v50 }
 0x762   : > { %v2991_v51 = vpop.eup %2990 }
 0x763   : > { %v2104_v34 = vadd.f32 1.0, %v2991_v51  ;;  %v2993_v39 = vpop.eup %2992 }
 0x764   : > { %v2111_v12 = vadd.f32 1.0, %v2993_v39 }
 0x765   : > { %2994 = vrcp.f32 %v2104_v34 }
 0x76f   : > { %v2995_v44 = vpop.eup %2994 }
 0x770   : > { %v2115_v20 = vmul.f32 %v2995_v44, %v2114_v4 }
 0x772   : > { %v2116_v0 = vadd.f32 %v2115_v20, %v3412_v22 }
 0x774   : > { %2996 = vtanh.f32 %v2116_v0 }
 0x775   : > { %2998 = vrcp.f32 %v2111_v12 }
 0x77e   : > { %v2997_v56 = vpop.eup %2996 }
 0x77f   : > { %v2118_v40 = vsub.f32 %v1944_v38, %v2997_v56  ;;  %v2999_v21 = vpop.eup %2998 }
 0x781   : > { %v2119_v46 = vmul.f32 %v2999_v21, %v2118_v40 }
 0x783   : > { %v2120_v27 = vadd.f32 %v2997_v56, %v2119_v46 }
 0x785   : > { %2122 = vst [vmem:[#allocation4 + $0x30] sm:$0xff] %v2120_v27  ;;  %2611 = vmatmul.mubr.msk.f32.vlgmr.msra.gmra.mrb[36].mxu1 %vm407_vm3, %v2120_v27  ;;  %2753 = vmatmul.mubr.msk.f32.vlgmr.msra.gmra.mrb[46].mxu0 %vm407_vm3, %v2120_v27 }
 0x786   : > { %2905 = vmatpush1.bf16.msra.mxu1 %v3184_v7  ;;  %2912 = vmatpush3.bf16.msra.mxu0 %v3238_v25 }
 0x787   : > { %2907 = vmatprep.subr.bf16.mxu1 %v3193_v13  ;;  %2913 = vmatprep.subr.bf16.mxu0 %v3029_v16 }
 0x788   : > { %2375 = vmatprep.mubr.f32.mxu1 %v3028_v35  ;;  %2763 = vmatprep.mubr.msk.f32.mxu0 %vm3030_vm4, %v3028_v35 }
 0x78a   : > { %2909 = vmatpush1.bf16.msra.mxu1 %v3198_v14  ;;  %2915 = vmatpush3.bf16.msra.mxu0 %v3247_v28 }
 0x858   : > { %v2201_v22 = vpop.f32.mrb[36].mxu1  ;;  %v2272_v5 = vpop.f32.mrb[46].mxu0 }
 0x859   : > { %v2276_v57 = vadd.f32 %v2201_v22, %v3374_v61  ;;  %v2203_v7 = vpop.f32.mrb[37].mxu1  ;;  %v2754_v23 = vpop.f32.mrb[47].mxu0  ;;  %v2290_v14 = vadd.f32 %v3443_v15, %v2272_v5 }
 0x85a   : > { %v2283_v25 = vadd.f32 %v2203_v7, %v3404_v1 }
 0x85b   : > { %v2613_v13 = vmul.f32 -1.442695, %v2276_v57 }
 0x85c   : > { %v2614_v16 = vmul.f32 -1.442695, %v2283_v25 }
 0x85d   : > { %3000 = vpow2.f32 %v2613_v13 }
 0x85e   : > { %3002 = vpow2.f32 %v2614_v16 }
 0x867   : > { %v3001_v2 = vpop.eup %3000 }
 0x868   : > { %v2280_v54 = vadd.f32 1.0, %v3001_v2  ;;  %v3003_v35 = vpop.eup %3002 }
 0x869   : > { %v2287_v32 = vadd.f32 1.0, %v3003_v35 }
 0x86a   : > { %3004 = vrcp.f32 %v2280_v54 }
 0x874   : > { %v3005_v9 = vpop.eup %3004 }
 0x875   : > { %v2291_v28 = vmul.f32 %v3005_v9, %v2290_v14 }
 0x877   : > { %v2292_v10 = vadd.f32 %v2291_v28, %v3406_v8 }
 0x879   : > { %3006 = vtanh.f32 %v2292_v10 }
 0x87a   : > { %3008 = vrcp.f32 %v2287_v32 }
 0x883   : > { %v3007_v61 = vpop.eup %3006 }
 0x884   : > { %v2294_v3 = vsub.f32 %v2120_v27, %v3007_v61  ;;  %v3009_v1 = vpop.eup %3008 }
 0x886   : > { %v2295_v11 = vmul.f32 %v3009_v1, %v2294_v3 }
 0x888   : > { %v2296_v18 = vadd.f32 %v3007_v61, %v2295_v11 }
 0x88a   : > { %2298 = vst [vmem:[#allocation4 + $0x38] sm:$0xff] %v2296_v18  ;;  %2615 = vmatmul.mubr.msk.f32.vlgmr.msra.gmra.mrb[38].mxu1 %vm407_vm3, %v2296_v18  ;;  %2764 = vmatmul.mubr.msk.f32.vlgmr.msra.gmra.mrb[48].mxu0 %vm407_vm3, %v2296_v18 }
 0x95d   : > { %v2377_v19 = vpop.f32.mrb[38].mxu1  ;;  %v2448_v30 = vpop.f32.mrb[48].mxu0 }
 0x95e   : > { %v2452_v53 = vadd.f32 %v2377_v19, %v3392_v33  ;;  %v2379_v29 = vpop.f32.mrb[39].mxu1  ;;  %v2765_v6 = vpop.f32.mrb[49].mxu0  ;;  %v2466_v59 = vadd.f32 %v3443_v15, %v2448_v30 }
 0x95f   : > { %v2459_v8 = vadd.f32 %v2379_v29, %v3398_v60 }
 0x960   : > { %v2617_v49 = vmul.f32 -1.442695, %v2452_v53 }
 0x961   : > { %v2618_v58 = vmul.f32 -1.442695, %v2459_v8 }
 0x962   : > { %3010 = vpow2.f32 %v2617_v49 }
 0x963   : > { %3012 = vpow2.f32 %v2618_v58 }
 0x96c   : > { %v3011_v17 = vpop.eup %3010 }
 0x96d   : > { %v2456_v55 = vadd.f32 1.0, %v3011_v17  ;;  %v3013_v47 = vpop.eup %3012 }
 0x96e   : > { %v2463_v63 = vadd.f32 1.0, %v3013_v47 }
 0x96f   : > { %3014 = vrcp.f32 %v2456_v55 }
 0x979   : > { %v3015_v41 = vpop.eup %3014 }
 0x97a   : > { %v2467_v31 = vmul.f32 %v3015_v41, %v2466_v59 }
 0x97c   : > { %v2468_v48 = vadd.f32 %v2467_v31, %v3400_v62 }
 0x97e   : > { %3016 = vtanh.f32 %v2468_v48 }
 0x97f   : > { %3018 = vrcp.f32 %v2463_v63 }
 0x988   : > { %v3017_v33 = vpop.eup %3016 }
 0x989   : > { %v2470_v45 = vsub.f32 %v2296_v18, %v3017_v33  ;;  %v3019_v60 = vpop.eup %3018  ;;  %2478 = sbr.rel (%p2619_p6) target bundleno = 2448 (0x990), region = 52 }
 0x98b   : > { %v2471_v38 = vmul.f32 %v3019_v60, %v2470_v45 }
 0x98d   : > { %v2472_v37 = vadd.f32 %v3017_v33, %v2471_v38 }
 0x98f   : > { %2474 = vst [vmem:[#allocation4 + $0x40] sm:$0xff] %v2472_v37  ;;  %2479 = vst [vmem:[%s3598_s5] sm:$0xff] (!%p2619_p6), %v2472_v37 }
 0x990 PF: > { %s15_s18 = sadd.s32 1, %s3026_s18  }
 0x991   : > { %p12_p7 = scmp.ge.s32.totalorder %s15_s18, 4  }
 0x993   :  { %14 = sbr.rel (!%p12_p7) target bundleno = 1 (0x1), region = 120 }

</bundles_post_ra>
